<compile_context>
chip_gen: v7x
topology: tpu7x:2x2x1
jax: 0.10.0
libtpu: 0.0.40
codegen_flags: <defaults>
</compile_context>

<pallas_src>
import functools

import jax
import jax.numpy as jnp
from jax.experimental import pallas as pl
from jax.experimental.pallas import tpu as pltpu


PAD_GRAN = 256            # node padding granularity (keeps every tile choice divisible)
FUSED_MAX_NODES = 1024    # fused single-call path when n_pad <= this (a_hat <= 2 MiB bf16)
C_PAD = 128               # lane-dense class padding for the final store
NEG_INF = -1e30


def _round_up(x, m):
    return ((x + m - 1) // m) * m


def _vmem_limit_bytes():
    # Generation-aware scoped-VMEM limit; conservative fallback works everywhere
    # (v5e/v6e: 128 MiB physical, v7x: 64 MiB physical).
    default = 32 * 1024 * 1024
    try:
        cap = int(pltpu.get_tpu_info().vmem_capacity_bytes)
        if cap >= 64 * 1024 * 1024:
            return min(cap // 2, 64 * 1024 * 1024)
    except Exception:
        pass
    return default


def _choose_tiles(n_pad):
    # >= 2 row tiles so the "parallel" axis feeds both v7x TensorCores;
    # 512-wide k tiles keep the HBM-bound a_hat stream near roofline.
    tm = 256 if n_pad >= 512 else 128
    tk = 512 if n_pad % 512 == 0 else 256
    return tm, tk


# ---------------------------------------------------------------------------
# Adjacency construction (glue, plain JAX) — built directly transposed:
#   a_hat[d, s] = counts[s, d] * deg[s]^-1/2 * deg[d]^-1/2
# matching get_normalized_adj_with_renormalization (COO duplicate summation,
# self loops removed then exactly one re-added per node).
# ---------------------------------------------------------------------------
def build_a_hat(edge_index, num_nodes, n_pad=None, dtype=jnp.float32):
    if n_pad is None:
        n_pad = num_nodes
    src, dst = edge_index[0], edge_index[1]
    # counts_t[d, s] = #edges s->d   (already transposed)
    counts_t = jnp.zeros((num_nodes, num_nodes), jnp.float32).at[dst, src].add(1.0)
    eye = jnp.eye(num_nodes, dtype=jnp.float32)
    counts_t = counts_t * (1.0 - eye) + eye          # drop self loops, add exactly one
    deg = jnp.sum(counts_t, axis=1)                  # degree(dst) incl. self loop
    dinv = jnp.where(deg > 0.0, deg ** -0.5, 0.0)    # masked_fill(inf, 0)
    a_hat = counts_t * dinv[:, None] * dinv[None, :]
    a_hat = a_hat.astype(dtype)
    if n_pad > num_nodes:
        p = n_pad - num_nodes
        a_hat = jnp.pad(a_hat, ((0, p), (0, p)))
    return a_hat


# ---------------------------------------------------------------------------
# Shared MLP + log_softmax epilogue on VALUES (bf16 activations, f32 accumulate).
# Last weight/bias are lane-padded to C_PAD with zero weights / -1e30 bias so the
# pad logits vanish under the logsumexp and the store is lane-dense.
# ---------------------------------------------------------------------------
def _mlp_logsoftmax_vals(h_bf16, pvals, num_lins):
    h = h_bf16
    z = None
    for i in range(num_lins):
        w = pvals[2 * i]            # bf16 [d_in, d_out]
        b = pvals[2 * i + 1]        # f32  [1, d_out]
        z = jnp.dot(h, w, preferred_element_type=jnp.float32) + b
        if i != num_lins - 1:
            h = jnp.maximum(z, 0.0).astype(jnp.bfloat16)
    m = jnp.max(z, axis=-1, keepdims=True)
    s = z - m
    lse = jnp.log(jnp.sum(jnp.exp(s), axis=-1, keepdims=True))
    return s - lse


# ---------------------------------------------------------------------------
# Path 1 — fused single-call forward (small/medium graphs, a_hat resident in VMEM)
# ---------------------------------------------------------------------------
def _fused_forward_kernel(*refs, num_layers, num_lins):
    a_ref, h_ref = refs[0], refs[1]
    o_ref = refs[-1]
    params = refs[2:-1]

    a = a_ref[...]                                  # bf16 (n_pad, n_pad), resident
    h = h_ref[...]                                  # bf16 (n_pad, F)
    for _ in range(num_layers):
        h = jnp.dot(a, h, preferred_element_type=jnp.float32).astype(jnp.bfloat16)

    pvals = [p[...] for p in params]
    o_ref[...] = _mlp_logsoftmax_vals(h, pvals, num_lins).astype(o_ref.dtype)


def _fused_forward(a_pad, h0, weights, biases, num_layers):
    n_pad, f = h0.shape
    num_lins = len(weights)
    c_pad = weights[-1].shape[1]

    in_specs = [
        pl.BlockSpec((n_pad, n_pad), lambda i: (0, 0)),
        pl.BlockSpec((n_pad, f), lambda i: (0, 0)),
    ]
    args = [a_pad, h0]
    for w, b in zip(weights, biases):
        d_in, d_out = w.shape
        in_specs.append(pl.BlockSpec((d_in, d_out), lambda i: (0, 0)))
        in_specs.append(pl.BlockSpec((1, d_out), lambda i: (0, 0)))
        args.append(w)
        args.append(b)

    kernel = functools.partial(_fused_forward_kernel,
                               num_layers=num_layers, num_lins=num_lins)
    return pl.pallas_call(
        kernel,
        out_shape=jax.ShapeDtypeStruct((n_pad, c_pad), jnp.float32),
        grid=(1,),
        in_specs=in_specs,
        out_specs=pl.BlockSpec((n_pad, c_pad), lambda i: (0, 0)),
        compiler_params=pltpu.CompilerParams(
            dimension_semantics=("arbitrary",),
            vmem_limit_bytes=_vmem_limit_bytes(),
        ),
    )(*args)


# ---------------------------------------------------------------------------
# Path 2 — large-N tiled propagate (h resident in VMEM, a_hat streamed in
# 256x512 bf16 tiles, f32 accumulator, >= 2 parallel row tiles).
# ---------------------------------------------------------------------------
def _propagate_kernel(a_ref, h_ref, o_ref, acc_ref):
    k = pl.program_id(1)
    tk = a_ref.shape[1]

    @pl.when(k == 0)
    def _():
        acc_ref[...] = jnp.zeros_like(acc_ref)

    off = pl.multiple_of(k * tk, tk)
    acc_ref[...] += jnp.dot(a_ref[...], h_ref[pl.ds(off, tk), :],
                            preferred_element_type=jnp.float32)

    @pl.when(k == pl.num_programs(1) - 1)
    def _():
        o_ref[...] = acc_ref[...].astype(o_ref.dtype)


def _propagate_tiled(a_pad, h_pad, tm, tk):
    n_pad, f = h_pad.shape
    grid = (n_pad // tm, n_pad // tk)
    return pl.pallas_call(
        _propagate_kernel,
        out_shape=jax.ShapeDtypeStruct((n_pad, f), jnp.bfloat16),
        grid=grid,
        in_specs=[
            pl.BlockSpec((tm, tk), lambda i, k: (i, k)),
            pl.BlockSpec((n_pad, f), lambda i, k: (0, 0)),   # h VMEM-resident
        ],
        out_specs=pl.BlockSpec((tm, f), lambda i, k: (i, 0)),
        scratch_shapes=[pltpu.VMEM((tm, f), jnp.float32)],
        compiler_params=pltpu.CompilerParams(
            dimension_semantics=("parallel", "arbitrary"),
            vmem_limit_bytes=_vmem_limit_bytes(),
        ),
    )(a_pad, h_pad)


# Last propagate with the MLP + log_softmax fused into the k-loop finalize.
def _propagate_mlp_kernel(*refs, num_lins):
    a_ref, h_ref = refs[0], refs[1]
    o_ref, acc_ref = refs[-2], refs[-1]
    params = refs[2:-2]

    k = pl.program_id(1)
    tk = a_ref.shape[1]

    @pl.when(k == 0)
    def _():
        acc_ref[...] = jnp.zeros_like(acc_ref)

    off = pl.multiple_of(k * tk, tk)
    acc_ref[...] += jnp.dot(a_ref[...], h_ref[pl.ds(off, tk), :],
                            preferred_element_type=jnp.float32)

    @pl.when(k == pl.num_programs(1) - 1)
    def _():
        pvals = [p[...] for p in params]
        h = acc_ref[...].astype(jnp.bfloat16)
        o_ref[...] = _mlp_logsoftmax_vals(h, pvals, num_lins).astype(o_ref.dtype)


def _propagate_mlp_tiled(a_pad, h_pad, weights, biases, tm, tk):
    n_pad, f = h_pad.shape
    num_lins = len(weights)
    c_pad = weights[-1].shape[1]
    grid = (n_pad // tm, n_pad // tk)

    in_specs = [
        pl.BlockSpec((tm, tk), lambda i, k: (i, k)),
        pl.BlockSpec((n_pad, f), lambda i, k: (0, 0)),       # h VMEM-resident
    ]
    args = [a_pad, h_pad]
    for w, b in zip(weights, biases):
        d_in, d_out = w.shape
        in_specs.append(pl.BlockSpec((d_in, d_out), lambda i, k: (0, 0)))
        in_specs.append(pl.BlockSpec((1, d_out), lambda i, k: (0, 0)))
        args.append(w)
        args.append(b)

    kernel = functools.partial(_propagate_mlp_kernel, num_lins=num_lins)
    return pl.pallas_call(
        kernel,
        out_shape=jax.ShapeDtypeStruct((n_pad, c_pad), jnp.float32),
        grid=grid,
        in_specs=in_specs,
        out_specs=pl.BlockSpec((tm, c_pad), lambda i, k: (i, 0)),
        scratch_shapes=[pltpu.VMEM((tm, f), jnp.float32)],
        compiler_params=pltpu.CompilerParams(
            dimension_semantics=("parallel", "arbitrary"),
            vmem_limit_bytes=_vmem_limit_bytes(),
        ),
    )(*args)


# ---------------------------------------------------------------------------
# Full SGC_Net forward
# ---------------------------------------------------------------------------
def sgc_forward(x, edge_index, weights_t, biases, num_layers, *, force_tiled=False):
    n, f = x.shape
    num_lins = len(weights_t)
    c = weights_t[-1].shape[1]

    n_pad = _round_up(n, PAD_GRAN)
    a_pad = build_a_hat(edge_index, n, n_pad, jnp.bfloat16)      # bf16, pre-transposed
    h0 = jnp.pad(x.astype(jnp.bfloat16), ((0, n_pad - n), (0, 0)))

    # Pack params: weights bf16 [in, out]; biases f32 [1, out]. Last layer is
    # lane-padded to C_PAD (zero weights, -1e30 bias) for a lane-dense final store;
    # the pad logits vanish under the logsumexp so real-class log_softmax is exact.
    w_list, b_list = [], []
    for i, (w, b) in enumerate(zip(weights_t, biases)):
        w = w.astype(jnp.bfloat16)
        b = b.astype(jnp.float32)
        if i == num_lins - 1 and w.shape[1] < C_PAD:
            pad = C_PAD - w.shape[1]
            w = jnp.pad(w, ((0, 0), (0, pad)))
            b = jnp.pad(b, (0, pad), constant_values=NEG_INF)
        w_list.append(w)
        b_list.append(b.reshape(1, -1))

    if (not force_tiled) and n_pad <= FUSED_MAX_NODES:
        out_pad = _fused_forward(a_pad, h0, w_list, b_list, num_layers)
    else:
        tm, tk = _choose_tiles(n_pad)
        h = h0
        for _ in range(num_layers - 1):
            h = _propagate_tiled(a_pad, h, tm, tk)
        out_pad = _propagate_mlp_tiled(a_pad, h, w_list, b_list, tm, tk)

    return out_pad[:n, :c]


# ---------------------------------------------------------------------------
# Deterministic parameter init (shapes from SGC_Net.__init__; values synthetic)
# ---------------------------------------------------------------------------
def init_params(key, dims):
    weights_t, biases = [], []
    for d_in, d_out in dims:
        key, k1, k2 = jax.random.split(key, 3)
        bound = 1.0 / (d_in ** 0.5)
        # stored as [in, out]  (== PyTorch Linear weight [out, in] transposed)
        w_t = jax.random.uniform(k1, (d_in, d_out), jnp.float32, -bound, bound)
        b = jax.random.uniform(k2, (d_out,), jnp.float32, -bound, bound)
        weights_t.append(w_t)
        biases.append(b)
    return weights_t, biases


if __name__ == "__main__":
    key = jax.random.PRNGKey(0)
    N, F, H, C = 200, 16, 32, 8         # nodes (ragged vs tile), features, hidden, classes
    NUM_LAYERS = 3                      # args.num_layers (= num_lins)
    E = 512                             # number of edges

    key, kx, ke, kp = jax.random.split(key, 4)
    x = jax.random.normal(kx, (N, F), jnp.float32)
    edge_index = jax.random.randint(ke, (2, E), 0, N, dtype=jnp.int32)

    dims = [(F, H)] + [(H, H)] * (NUM_LAYERS - 2) + [(H, C)]
    weights_t, biases = init_params(kp, dims)

    # fused single-call path (primary for this size) and tiled fallback path
    out_fused = jax.block_until_ready(
        sgc_forward(x, edge_index, weights_t, biases, NUM_LAYERS))
    out_tiled = jax.block_until_ready(
        sgc_forward(x, edge_index, weights_t, biases, NUM_LAYERS, force_tiled=True))
    assert out_fused.shape == (N, C)
    assert out_tiled.shape == (N, C)

    # (a) precision-matched reference (same bf16-operand / f32-accumulate policy)
    a_bf = build_a_hat(edge_index, N, dtype=jnp.bfloat16)
    h = x.astype(jnp.bfloat16)
    for _ in range(NUM_LAYERS):
        h = jnp.dot(a_bf, h, preferred_element_type=jnp.float32).astype(jnp.bfloat16)
    z = None
    for i, (w_t, b) in enumerate(zip(weights_t, biases)):
        z = jnp.dot(h, w_t.astype(jnp.bfloat16),
                    preferred_element_type=jnp.float32) + b
        if i != len(weights_t) - 1:
            h = jnp.maximum(z, 0.0).astype(jnp.bfloat16)
    ref_a = jax.nn.log_softmax(z, axis=1)
    assert jnp.allclose(out_fused, ref_a, atol=2e-2, rtol=2e-2)
    assert jnp.allclose(out_tiled, ref_a, atol=2e-2, rtol=2e-2)

    # (b) pure-f32 reference (spec semantics); looser tolerance due to bf16 streaming
    a32 = build_a_hat(edge_index, N)
    ref32 = x
    for _ in range(NUM_LAYERS):
        ref32 = a32 @ ref32
    for i, (w_t, b) in enumerate(zip(weights_t, biases)):
        ref32 = ref32 @ w_t + b
        if i != len(weights_t) - 1:
            ref32 = jnp.maximum(ref32, 0.0)
    ref32 = jax.nn.log_softmax(ref32, axis=1)
    assert jnp.allclose(out_fused, ref32, atol=1e-1, rtol=1e-1)
    assert jnp.allclose(out_tiled, ref32, atol=1e-1, rtol=1e-1)

    print("KERNEL_OK")
</pallas_src>

<mosaic_0001>
module attributes {stable_mosaic.version = 11 : i64} {
  func.func @_fused_forward_kernel(%arg0: i32, %arg1: memref<256x256xbf16, #tpu.memory_space<vmem>>, %arg2: memref<256x16xbf16, #tpu.memory_space<vmem>>, %arg3: memref<16x32xbf16, #tpu.memory_space<vmem>>, %arg4: memref<1x32xf32, #tpu.memory_space<vmem>>, %arg5: memref<32x32xbf16, #tpu.memory_space<vmem>>, %arg6: memref<1x32xf32, #tpu.memory_space<vmem>>, %arg7: memref<32x128xbf16, #tpu.memory_space<vmem>>, %arg8: memref<1x128xf32, #tpu.memory_space<vmem>>, %arg9: memref<256x128xf32, #tpu.memory_space<vmem>>) attributes {dimension_semantics = [#tpu.dimension_semantics<arbitrary>], iteration_bounds = array<i64: 1>, scalar_prefetch = 0 : i64, scratch_operands = 0 : i64, tpu.core_type = #tpu.core_type<tc>, window_params = [{pipeline_mode = #tpu.pipeline_mode<synchronous>, transform_indices = @transform_0, window_bounds = array<i64: 256, 256>}, {pipeline_mode = #tpu.pipeline_mode<synchronous>, transform_indices = @transform_1, window_bounds = array<i64: 256, 16>}, {pipeline_mode = #tpu.pipeline_mode<synchronous>, transform_indices = @transform_2, window_bounds = array<i64: 16, 32>}, {pipeline_mode = #tpu.pipeline_mode<synchronous>, transform_indices = @transform_3, window_bounds = array<i64: 1, 32>}, {pipeline_mode = #tpu.pipeline_mode<synchronous>, transform_indices = @transform_4, window_bounds = array<i64: 32, 32>}, {pipeline_mode = #tpu.pipeline_mode<synchronous>, transform_indices = @transform_5, window_bounds = array<i64: 1, 32>}, {pipeline_mode = #tpu.pipeline_mode<synchronous>, transform_indices = @transform_6, window_bounds = array<i64: 32, 128>}, {pipeline_mode = #tpu.pipeline_mode<synchronous>, transform_indices = @transform_7, window_bounds = array<i64: 1, 128>}, {pipeline_mode = #tpu.pipeline_mode<synchronous>, transform_indices = @transform_8, window_bounds = array<i64: 256, 128>}]} {
    %c0 = arith.constant 0 : index
    %c0_0 = arith.constant 0 : index
    %0 = vector.load %arg1[%c0, %c0_0] : memref<256x256xbf16, #tpu.memory_space<vmem>>, vector<256x256xbf16>
    %c0_1 = arith.constant 0 : index
    %c0_2 = arith.constant 0 : index
    %1 = vector.load %arg2[%c0_1, %c0_2] : memref<256x16xbf16, #tpu.memory_space<vmem>>, vector<256x16xbf16>
    %cst = arith.constant dense<0.000000e+00> : vector<256x16xf32>
    %2 = tpu.matmul %0, %1, %cst {dimension_numbers = #tpu.dot_dimension_numbers<[1], [0], [0], [1], [0, 0, 1, 1], [], []>} : vector<256x256xbf16>, vector<256x16xbf16>, vector<256x16xf32> -> vector<256x16xf32>
    %3 = arith.truncf %2 : vector<256x16xf32> to vector<256x16xbf16>
    %cst_3 = arith.constant dense<0.000000e+00> : vector<256x16xf32>
    %4 = tpu.matmul %0, %3, %cst_3 {dimension_numbers = #tpu.dot_dimension_numbers<[1], [0], [0], [1], [0, 0, 1, 1], [], []>} : vector<256x256xbf16>, vector<256x16xbf16>, vector<256x16xf32> -> vector<256x16xf32>
    %5 = arith.truncf %4 : vector<256x16xf32> to vector<256x16xbf16>
    %cst_4 = arith.constant dense<0.000000e+00> : vector<256x16xf32>
    %6 = tpu.matmul %0, %5, %cst_4 {dimension_numbers = #tpu.dot_dimension_numbers<[1], [0], [0], [1], [0, 0, 1, 1], [], []>} : vector<256x256xbf16>, vector<256x16xbf16>, vector<256x16xf32> -> vector<256x16xf32>
    %7 = arith.truncf %6 : vector<256x16xf32> to vector<256x16xbf16>
    %c0_5 = arith.constant 0 : index
    %c0_6 = arith.constant 0 : index
    %8 = vector.load %arg3[%c0_5, %c0_6] : memref<16x32xbf16, #tpu.memory_space<vmem>>, vector<16x32xbf16>
    %c0_7 = arith.constant 0 : index
    %c0_8 = arith.constant 0 : index
    %9 = vector.load %arg4[%c0_7, %c0_8] : memref<1x32xf32, #tpu.memory_space<vmem>>, vector<1x32xf32>
    %c0_9 = arith.constant 0 : index
    %c0_10 = arith.constant 0 : index
    %10 = vector.load %arg5[%c0_9, %c0_10] : memref<32x32xbf16, #tpu.memory_space<vmem>>, vector<32x32xbf16>
    %c0_11 = arith.constant 0 : index
    %c0_12 = arith.constant 0 : index
    %11 = vector.load %arg6[%c0_11, %c0_12] : memref<1x32xf32, #tpu.memory_space<vmem>>, vector<1x32xf32>
    %c0_13 = arith.constant 0 : index
    %c0_14 = arith.constant 0 : index
    %12 = vector.load %arg7[%c0_13, %c0_14] : memref<32x128xbf16, #tpu.memory_space<vmem>>, vector<32x128xbf16>
    %c0_15 = arith.constant 0 : index
    %c0_16 = arith.constant 0 : index
    %13 = vector.load %arg8[%c0_15, %c0_16] : memref<1x128xf32, #tpu.memory_space<vmem>>, vector<1x128xf32>
    %cst_17 = arith.constant dense<0.000000e+00> : vector<256x32xf32>
    %14 = tpu.matmul %7, %8, %cst_17 {dimension_numbers = #tpu.dot_dimension_numbers<[1], [0], [0], [1], [0, 0, 1, 1], [], []>} : vector<256x16xbf16>, vector<16x32xbf16>, vector<256x32xf32> -> vector<256x32xf32>
    %15 = vector.broadcast %9 : vector<1x32xf32> to vector<256x32xf32>
    %16 = arith.addf %14, %15 : vector<256x32xf32>
    %cst_18 = arith.constant 0.000000e+00 : f32
    %17 = vector.broadcast %cst_18 : f32 to vector<256x32xf32>
    %18 = arith.maximumf %16, %17 : vector<256x32xf32>
    %19 = arith.truncf %18 : vector<256x32xf32> to vector<256x32xbf16>
    %cst_19 = arith.constant dense<0.000000e+00> : vector<256x32xf32>
    %20 = tpu.matmul %19, %10, %cst_19 {dimension_numbers = #tpu.dot_dimension_numbers<[1], [0], [0], [1], [0, 0, 1, 1], [], []>} : vector<256x32xbf16>, vector<32x32xbf16>, vector<256x32xf32> -> vector<256x32xf32>
    %21 = vector.broadcast %11 : vector<1x32xf32> to vector<256x32xf32>
    %22 = arith.addf %20, %21 : vector<256x32xf32>
    %cst_20 = arith.constant 0.000000e+00 : f32
    %23 = vector.broadcast %cst_20 : f32 to vector<256x32xf32>
    %24 = arith.maximumf %22, %23 : vector<256x32xf32>
    %25 = arith.truncf %24 : vector<256x32xf32> to vector<256x32xbf16>
    %cst_21 = arith.constant dense<0.000000e+00> : vector<256x128xf32>
    %26 = tpu.matmul %25, %12, %cst_21 {dimension_numbers = #tpu.dot_dimension_numbers<[1], [0], [0], [1], [0, 0, 1, 1], [], []>} : vector<256x32xbf16>, vector<32x128xbf16>, vector<256x128xf32> -> vector<256x128xf32>
    %27 = vector.broadcast %13 : vector<1x128xf32> to vector<256x128xf32>
    %28 = arith.addf %26, %27 : vector<256x128xf32>
    %cst_22 = arith.constant dense<0xFF800000> : vector<256xf32>
    %29 = vector.multi_reduction <maximumf>, %28, %cst_22 [1] : vector<256x128xf32> to vector<256xf32>
    %30 = vector.shape_cast %29 : vector<256xf32> to vector<256x1xf32>
    %31 = vector.broadcast %30 : vector<256x1xf32> to vector<256x128xf32>
    %32 = arith.subf %28, %31 : vector<256x128xf32>
    %33 = math.exp %32 : vector<256x128xf32>
    %cst_23 = arith.constant dense<0.000000e+00> : vector<256xf32>
    %34 = vector.multi_reduction <add>, %33, %cst_23 [1] : vector<256x128xf32> to vector<256xf32>
    %35 = vector.shape_cast %34 : vector<256xf32> to vector<256x1xf32>
    %36 = math.log %35 : vector<256x1xf32>
    %37 = vector.broadcast %36 : vector<256x1xf32> to vector<256x128xf32>
    %38 = arith.subf %32, %37 : vector<256x128xf32>
    %c0_24 = arith.constant 0 : index
    %c0_25 = arith.constant 0 : index
    %39 = vector.load %arg9[%c0_24, %c0_25] : memref<256x128xf32, #tpu.memory_space<vmem>>, vector<256x128xf32>
    tpu.vector_store %arg9[%c0_24, %c0_25], %38 {strides = array<i32>} : memref<256x128xf32, #tpu.memory_space<vmem>>, vector<256x128xf32>,
    return
  }
  func.func @transform_0(%arg0: i32) -> (i32, i32) {
    %c0_i32 = arith.constant 0 : i32
    %c0_i32_0 = arith.constant 0 : i32
    %c0_i32_1 = arith.constant 0 : i32
    return %c0_i32, %c0_i32_0 : i32, i32
  }
  func.func @transform_1(%arg0: i32) -> (i32, i32) {
    %c0_i32 = arith.constant 0 : i32
    %c0_i32_0 = arith.constant 0 : i32
    %c0_i32_1 = arith.constant 0 : i32
    return %c0_i32, %c0_i32_0 : i32, i32
  }
  func.func @transform_2(%arg0: i32) -> (i32, i32) {
    %c0_i32 = arith.constant 0 : i32
    %c0_i32_0 = arith.constant 0 : i32
    %c0_i32_1 = arith.constant 0 : i32
    return %c0_i32, %c0_i32_0 : i32, i32
  }
  func.func @transform_3(%arg0: i32) -> (i32, i32) {
    %c0_i32 = arith.constant 0 : i32
    %c0_i32_0 = arith.constant 0 : i32
    %c0_i32_1 = arith.constant 0 : i32
    return %c0_i32, %c0_i32_0 : i32, i32
  }
  func.func @transform_4(%arg0: i32) -> (i32, i32) {
    %c0_i32 = arith.constant 0 : i32
    %c0_i32_0 = arith.constant 0 : i32
    %c0_i32_1 = arith.constant 0 : i32
    return %c0_i32, %c0_i32_0 : i32, i32
  }
  func.func @transform_5(%arg0: i32) -> (i32, i32) {
    %c0_i32 = arith.constant 0 : i32
    %c0_i32_0 = arith.constant 0 : i32
    %c0_i32_1 = arith.constant 0 : i32
    return %c0_i32, %c0_i32_0 : i32, i32
  }
  func.func @transform_6(%arg0: i32) -> (i32, i32) {
    %c0_i32 = arith.constant 0 : i32
    %c0_i32_0 = arith.constant 0 : i32
    %c0_i32_1 = arith.constant 0 : i32
    return %c0_i32, %c0_i32_0 : i32, i32
  }
  func.func @transform_7(%arg0: i32) -> (i32, i32) {
    %c0_i32 = arith.constant 0 : i32
    %c0_i32_0 = arith.constant 0 : i32
    %c0_i32_1 = arith.constant 0 : i32
    return %c0_i32, %c0_i32_0 : i32, i32
  }
  func.func @transform_8(%arg0: i32) -> (i32, i32) {
    %c0_i32 = arith.constant 0 : i32
    %c0_i32_0 = arith.constant 0 : i32
    %c0_i32_1 = arith.constant 0 : i32
    return %c0_i32, %c0_i32_0 : i32, i32
  }
}

</mosaic_0001>

<bundles_post_ra>
// kernel: tpu_custom_call.1
= control target key start
LH: loop header
LB: loop body
LE: loop exit
PB: predicated region body
PF: predicated region fallthrough
CT: control target
= control target key end

     0   :  { %13 = vsyncpa [#allocation3], 0  ;;  %s3770_s0 = inlined_call_operand.hbm [shape: bf16[256,256], index: 0, kind: input, shape index: {}]   ;;  %s3771_s1 = inlined_call_operand.vmem [shape: bf16[256,16], index: 1, kind: input, shape index: {}]   ;;  %s3772_s2 = inlined_call_operand.vmem [shape: bf16[16,32], index: 2, kind: input, shape index: {}]   ;;  %s3773_s3 = inlined_call_operand.vmem [shape: f32[1,32], index: 3, kind: input, shape index: {}]   ;;  %s3774_s4 = inlined_call_operand.vmem [shape: bf16[32,32], index: 4, kind: input, shape index: {}]   ;;  %s3775_s5 = inlined_call_operand.vmem [shape: f32[1,32], index: 5, kind: input, shape index: {}]   ;;  %s3776_s6 = inlined_call_operand.vmem [shape: bf16[32,128], index: 6, kind: input, shape index: {}]   ;;  %s3777_s7 = inlined_call_operand.vmem [shape: f32[1,128], index: 7, kind: input, shape index: {}]   ;;  %s3778_s8 = inlined_call_operand.hbm [shape: f32[256,128], index: 8, kind: output, shape index: {}]  }
   0x1   :  { %14 = vsyncpa [#allocation4], 0  ;;  %s2915_s27 = smov [#allocation2]   ;;  %s2867_s9 = scalar_lea.hbm %s3770_s0, 4096 }
   0x2   :  { %s20_s28 = sshll.u32 %s2915_s27, 4  ;;  %p2868_p0 = scmp.ne.s32.totalorder %s3770_s0, %s2867_s9  ;;  %s21_s28 = int_to_ptr.vmem [resolvable:$true] %s20_s28 }
   0x3   :  { %p2871_p1 = scmp.lt.u32.totalorder %s2867_s9, %s3770_s0 }
   0x5   :  { %p2873_p2 = pnand %p2871_p1, %p2868_p0 }
   0x7   :  { %2876 = shalt.err (!%p2873_p2)
}
   0x8   :  { %s2877_s14 = scalar_lea.vmem %s21_s28, 4096  ;;  %p2882_p4 = scmp.lt.s32.totalorder %s21_s28, %s21_s28 }
   0x9   :  { %p2878_p3 = scmp.ne.s32.totalorder %s21_s28, %s2877_s14  ;;  %p2883_p5 = scmp.lt.s32.totalorder %s2877_s14, %s2877_s14 }
   0xb   :  { %p2884_p6 = por %p2883_p5, %p2882_p4 }
   0xd   :  { %p2885_p7 = pnand %p2884_p6, %p2878_p3 }
   0xf   :  { %2888 = shalt.err (!%p2885_p7)
}
  0x10   :  { %s2916_s15 = smov 128   ;;  %s2917_s16 = smov 8  }
  0x11   :  { %26 = dma.hbm_to_vmem [thread:$0]  %s3770_s0, 4096, %s21_s28, [#allocation3], %s2916_s15, %s2916_s15, %s2917_s16  }
  0x12   :  { %2911 = dma.done.wait [#allocation3], 4096  }
  0x13   :  { %2912 = vsyncadd [#allocation3], 4294963200  ;;  %v2670_v0 = vld [vmem:[%s3771_s1 + $0x40] sm:$0xff]   ;;  %v2672_v2 = vld [vmem:[%s3771_s1 + $0x48] sm:$0xff]   ;;  %vm921_vm0 = vcmask 130048   ;;  %vm1197_vm1 = vcmask 261120  }
  0x14   :  { %v2671_v1 = vld [vmem:[%s3771_s1] sm:$0xff]   ;;  %2155 = vmatprep.subr.bf16.mxu0 %v2670_v0  ;;  %2650 = vmatprep.subr.bf16.mxu1 %v2670_v0  ;;  %v2673_v3 = vld [vmem:[%s3771_s1 + $0x8] sm:$0xff]   ;;  %v2674_v4 = vld [vmem:[%s3771_s1 + $0x50] sm:$0xff]  }
  0x15   :  { %2156 = vmatpush3.bf16.msra.mxu0 %v2671_v1  ;;  %2658 = vmatpush3.bf16.msra.mxu1 %v2671_v1  ;;  %v2675_v5 = vld [vmem:[%s3771_s1 + $0x10] sm:$0xff]   ;;  %v2676_v6 = vld [vmem:[%s3771_s1 + $0x58] sm:$0xff]   ;;  %v2678_v8 = vld [vmem:[%s3771_s1 + $0x60] sm:$0xff]  }
  0x16   :  { %2157 = vmatprep.subr.bf16.mxu0 %v2672_v2  ;;  %2651 = vmatprep.subr.bf16.mxu1 %v2672_v2  ;;  %v2677_v7 = vld [vmem:[%s3771_s1 + $0x18] sm:$0xff]   ;;  %v2679_v9 = vld [vmem:[%s3771_s1 + $0x20] sm:$0xff]   ;;  %v2680_v10 = vld [vmem:[%s3771_s1 + $0x68] sm:$0xff]  }
  0x17   :  { %v3012_v11 = vld [vmem:[#allocation2 + $0x4] ss:$8 sps:$4 sm:$0xff]   ;;  %v2682_v13 = vld [vmem:[%s3771_s1 + $0x70] sm:$0xff]   ;;  %v2684_v15 = vld [vmem:[%s3771_s1 + $0x78] sm:$0xff]  }
  0x18   :  { %397 = vmatprep.mubr.bf16.mxu0 %v3012_v11  ;;  %v2681_v12 = vld [vmem:[%s3771_s1 + $0x28] sm:$0xff]   ;;  %v2683_v14 = vld [vmem:[%s3771_s1 + $0x30] sm:$0xff]   ;;  %v2685_v16 = vld [vmem:[%s3771_s1 + $0x38] sm:$0xff]  }
  0x19   :  { %2158 = vmatpush3.bf16.msra.mxu0 %v2673_v3  ;;  %2659 = vmatpush3.bf16.msra.mxu1 %v2673_v3  ;;  %v3030_v17 = vld [vmem:[#allocation2] ss:$8 sps:$4 sm:$0xff]   ;;  %v3032_v18 = vld [vmem:[#allocation2 + $0xc4] ss:$8 sps:$4 sm:$0xff]   ;;  %v3036_v20 = vld [vmem:[#allocation2 + $0x14] ss:$8 sps:$4 sm:$0xff]  }
  0x1a   :  { %2159 = vmatprep.subr.bf16.mxu0 %v2674_v4  ;;  %2652 = vmatprep.subr.bf16.mxu1 %v2674_v4  ;;  %v3034_v19 = vld [vmem:[#allocation2 + $0xc0] ss:$8 sps:$4 sm:$0xff]   ;;  %v3039_v21 = vld [vmem:[#allocation2 + $0xd4] ss:$8 sps:$4 sm:$0xff]   ;;  %v3045_v22 = vld [vmem:[#allocation2 + $0x10] ss:$8 sps:$4 sm:$0xff]  }
  0x1b   :  { %3793 = vst [vmem:[#allocation8_spill] sm:$0xff] %v3034_v19  ;;  %493 = vmatprep.mubr.bf16.mxu1 %v3032_v18  ;;  %3794 = vst [vmem:[#allocation9_spill] sm:$0xff] %v3039_v21  ;;  %v3047_v23 = vld [vmem:[#allocation2 + $0xd0] ss:$8 sps:$4 sm:$0xff]   ;;  %v3049_v24 = vld [vmem:[#allocation2 + $0x24] ss:$8 sps:$4 sm:$0xff]  }
  0x1c   :  { %3795 = vst [vmem:[#allocation10_spill] sm:$0xff] %v3047_v23  ;;  %v3051_v25 = vld [vmem:[#allocation2 + $0xe4] ss:$8 sps:$4 sm:$0xff]   ;;  %v3057_v26 = vld [vmem:[#allocation2 + $0x20] ss:$8 sps:$4 sm:$0xff]  }
  0x1d   :  { %2160 = vmatpush3.bf16.msra.mxu0 %v2675_v5  ;;  %2660 = vmatpush3.bf16.msra.mxu1 %v2675_v5  ;;  %3796 = vst [vmem:[#allocation11_spill] sm:$0xff] %v3051_v25  ;;  %v3059_v27 = vld [vmem:[#allocation2 + $0xe0] ss:$8 sps:$4 sm:$0xff]   ;;  %v3061_v28 = vld [vmem:[#allocation2 + $0x34] ss:$8 sps:$4 sm:$0xff]  }
  0x1e   :  { %2161 = vmatprep.subr.bf16.mxu0 %v2676_v6  ;;  %2653 = vmatprep.subr.bf16.mxu1 %v2676_v6  ;;  %3797 = vst [vmem:[#allocation12_spill] sm:$0xff] %v3059_v27  ;;  %v3063_v29 = vld [vmem:[#allocation2 + $0xf4] ss:$8 sps:$4 sm:$0xff]   ;;  %v3069_v30 = vld [vmem:[#allocation2 + $0x30] ss:$8 sps:$4 sm:$0xff]  }
  0x1f   :  { %3798 = vst [vmem:[#allocation13_spill] sm:$0xff] %v3063_v29  ;;  %v3071_v31 = vld [vmem:[#allocation2 + $0xf0] ss:$8 sps:$4 sm:$0xff]   ;;  %v3073_v32 = vld [vmem:[#allocation2 + $0x44] ss:$8 sps:$4 sm:$0xff]  }
  0x20   :  { %3799 = vst [vmem:[#allocation14_spill] sm:$0xff] %v3071_v31  ;;  %v3079_v33 = vld [vmem:[#allocation2 + $0x40] ss:$8 sps:$4 sm:$0xff]   ;;  %v3081_v34 = vld [vmem:[#allocation2 + $0x54] ss:$8 sps:$4 sm:$0xff]  }
  0x21   :  { %2162 = vmatpush3.bf16.msra.mxu0 %v2677_v7  ;;  %2661 = vmatpush3.bf16.msra.mxu1 %v2677_v7  ;;  %v3085_v35 = vld [vmem:[#allocation2 + $0x50] ss:$8 sps:$4 sm:$0xff]   ;;  %v3087_v36 = vld [vmem:[#allocation2 + $0x64] ss:$8 sps:$4 sm:$0xff]   ;;  %v3091_v37 = vld [vmem:[#allocation2 + $0x60] ss:$8 sps:$4 sm:$0xff]  }
  0x22   :  { %2163 = vmatprep.subr.bf16.mxu0 %v2678_v8  ;;  %2654 = vmatprep.subr.bf16.mxu1 %v2678_v8  ;;  %v3093_v38 = vld [vmem:[#allocation2 + $0x74] ss:$8 sps:$4 sm:$0xff]   ;;  %v3097_v39 = vld [vmem:[#allocation2 + $0x70] ss:$8 sps:$4 sm:$0xff]   ;;  %v3099_v40 = vld [vmem:[#allocation2 + $0x84] ss:$8 sps:$4 sm:$0xff]  }
  0x23   :  { %v3103_v41 = vld [vmem:[#allocation2 + $0x80] ss:$8 sps:$4 sm:$0xff]   ;;  %v3105_v42 = vld [vmem:[#allocation2 + $0x94] ss:$8 sps:$4 sm:$0xff]   ;;  %v3109_v43 = vld [vmem:[#allocation2 + $0x90] ss:$8 sps:$4 sm:$0xff]  }
  0x24   :  { %v3111_v44 = vld [vmem:[#allocation2 + $0xa4] ss:$8 sps:$4 sm:$0xff]   ;;  %v3115_v45 = vld [vmem:[#allocation2 + $0xa0] ss:$8 sps:$4 sm:$0xff]   ;;  %v3117_v46 = vld [vmem:[#allocation2 + $0xb4] ss:$8 sps:$4 sm:$0xff]  }
  0x25   :  { %2164 = vmatpush3.bf16.msra.mxu0 %v2679_v9  ;;  %2662 = vmatpush3.bf16.msra.mxu1 %v2679_v9  ;;  %v3121_v47 = vld [vmem:[#allocation2 + $0xb0] ss:$8 sps:$4 sm:$0xff]  }
  0x26   :  { %2165 = vmatprep.subr.bf16.mxu0 %v2680_v10  ;;  %2655 = vmatprep.subr.bf16.mxu1 %v2680_v10 }
  0x29   :  { %2166 = vmatpush3.bf16.msra.mxu0 %v2681_v12  ;;  %2663 = vmatpush3.bf16.msra.mxu1 %v2681_v12 }
  0x2a   :  { %2167 = vmatprep.subr.bf16.mxu0 %v2682_v13  ;;  %2656 = vmatprep.subr.bf16.mxu1 %v2682_v13 }
  0x2d   :  { %2168 = vmatpush3.bf16.msra.mxu0 %v2683_v14  ;;  %2664 = vmatpush3.bf16.msra.mxu1 %v2683_v14 }
  0x2e   :  { %2169 = vmatprep.subr.bf16.mxu0 %v2684_v15  ;;  %2657 = vmatprep.subr.bf16.mxu1 %v2684_v15 }
  0x31   :  { %2170 = vmatpush3.bf16.msra.mxu0 %v2685_v16  ;;  %2665 = vmatpush3.bf16.msra.mxu1 %v2685_v16 }
  0x34   :  { %398 = vmatmul.mubr.bf16.vlgmr.msra.gmra.mrb[0].mxu0 %v3030_v17  ;;  %494 = vmatmul.mubr.bf16.vlgmr.msra.gmra.mrb[0].mxu1 %v3034_v19 }
  0x35   :  { %405 = vmatprep.mubr.bf16.mxu0 %v3036_v20  ;;  %501 = vmatprep.mubr.bf16.mxu1 %v3039_v21 }
  0x3c   :  { %406 = vmatmul.mubr.bf16.gmra.mrb[4].mxu0 %v3045_v22  ;;  %502 = vmatmul.mubr.bf16.gmra.mrb[4].mxu1 %v3047_v23 }
  0x3d   :  { %413 = vmatprep.mubr.bf16.mxu0 %v3049_v24  ;;  %509 = vmatprep.mubr.bf16.mxu1 %v3051_v25 }
  0x44   :  { %414 = vmatmul.mubr.bf16.gmra.mrb[8].mxu0 %v3057_v26  ;;  %510 = vmatmul.mubr.bf16.gmra.mrb[8].mxu1 %v3059_v27 }
  0x45   :  { %421 = vmatprep.mubr.bf16.mxu0 %v3061_v28  ;;  %517 = vmatprep.mubr.bf16.mxu1 %v3063_v29 }
  0x4c   :  { %422 = vmatmul.mubr.bf16.gmra.mrb[12].mxu0 %v3069_v30  ;;  %518 = vmatmul.mubr.bf16.gmra.mrb[12].mxu1 %v3071_v31 }
  0x4d   :  { %429 = vmatprep.mubr.bf16.mxu0 %v3073_v32  ;;  %574 = vmatprep.mubr.bf16.mxu1 %v3012_v11 }
  0x54   :  { %430 = vmatmul.mubr.bf16.gmra.mrb[16].mxu0 %v3079_v33 }
  0x55   :  { %437 = vmatprep.mubr.bf16.mxu0 %v3081_v34 }
  0x5c   :  { %438 = vmatmul.mubr.bf16.gmra.mrb[20].mxu0 %v3085_v35 }
  0x5d   :  { %445 = vmatprep.mubr.bf16.mxu0 %v3087_v36 }
  0x64   :  { %446 = vmatmul.mubr.bf16.gmra.mrb[24].mxu0 %v3091_v37 }
  0x65   :  { %453 = vmatprep.mubr.bf16.mxu0 %v3093_v38 }
  0x6c   :  { %454 = vmatmul.mubr.bf16.gmra.mrb[28].mxu0 %v3097_v39 }
  0x6d   :  { %461 = vmatprep.mubr.bf16.mxu0 %v3099_v40 }
  0x74   :  { %462 = vmatmul.mubr.bf16.gmra.mrb[32].mxu0 %v3103_v41 }
  0x75   :  { %469 = vmatprep.mubr.bf16.mxu0 %v3105_v42 }
  0x7c   :  { %470 = vmatmul.mubr.bf16.gmra.mrb[36].mxu0 %v3109_v43 }
  0x7d   :  { %477 = vmatprep.mubr.bf16.mxu0 %v3111_v44 }
  0x84   :  { %478 = vmatmul.mubr.bf16.gmra.mrb[40].mxu0 %v3115_v45 }
  0x85   :  { %485 = vmatprep.mubr.bf16.mxu0 %v3117_v46 }
  0x8c   :  { %486 = vmatmul.mubr.bf16.gmra.mrb[44].mxu0 %v3121_v47 }
  0x8d   :  { %751 = vmatprep.mubr.bf16.mxu0 %v3012_v11 }
 0x107   :  { %v2171_v48 = vpop.f32.mrb[0].mxu0  ;;  %v2243_v49 = vpop.f32.mrb[0].mxu1 }
 0x108   :  { %v2172_v50 = vpop.f32.mrb[1].mxu0  ;;  %v2244_v51 = vpop.f32.mrb[1].mxu1 }
 0x109   :  { %v3125_v52 = vadd.f32 %v2172_v50, %v2171_v48  ;;  %v2174_v53 = vpop.f32.mrb[2].mxu0  ;;  %v3127_v54 = vadd.f32 %v2244_v51, %v2243_v49  ;;  %v2246_v55 = vpop.f32.mrb[2].mxu1 }
 0x10a   :  { %v2175_v56 = vpop.f32.mrb[3].mxu0  ;;  %v2247_v57 = vpop.f32.mrb[3].mxu1 }
 0x10b   :  { %v3129_v58 = vadd.f32 %v2175_v56, %v2174_v53  ;;  %v3131_v59 = vadd.f32 %v2247_v57, %v2246_v55 }
 0x10f   :  { %v2177_v62 = vpop.f32.mrb[4].mxu0  ;;  %v2249_v63 = vpop.f32.mrb[4].mxu1 }
 0x110   :  { %v2178_v0 = vpop.f32.mrb[5].mxu0  ;;  %v2250_v1 = vpop.f32.mrb[5].mxu1 }
 0x111   :  { %v3137_v2 = vadd.f32 %v2178_v0, %v2177_v62  ;;  %v2180_v3 = vpop.f32.mrb[6].mxu0  ;;  %v3139_v4 = vadd.f32 %v2250_v1, %v2249_v63  ;;  %v2252_v5 = vpop.f32.mrb[6].mxu1 }
 0x112   :  { %v2181_v6 = vpop.f32.mrb[7].mxu0  ;;  %v2253_v7 = vpop.f32.mrb[7].mxu1 }
 0x113   :  { %v3141_v8 = vadd.f32 %v2181_v6, %v2180_v3  ;;  %v3143_v9 = vadd.f32 %v2253_v7, %v2252_v5 }
 0x117   :  { %v2183_v12 = vpop.f32.mrb[8].mxu0  ;;  %v2255_v13 = vpop.f32.mrb[8].mxu1 }
 0x118   :  { %v2184_v14 = vpop.f32.mrb[9].mxu0  ;;  %v2256_v15 = vpop.f32.mrb[9].mxu1 }
 0x119   :  { %v3149_v16 = vadd.f32 %v2184_v14, %v2183_v12  ;;  %v2186_v48 = vpop.f32.mrb[10].mxu0  ;;  %v3151_v49 = vadd.f32 %v2256_v15, %v2255_v13  ;;  %v2258_v50 = vpop.f32.mrb[10].mxu1 }
 0x11a   :  { %v2187_v51 = vpop.f32.mrb[11].mxu0  ;;  %v2259_v53 = vpop.f32.mrb[11].mxu1 }
 0x11b   :  { %v3153_v55 = vadd.f32 %v2187_v51, %v2186_v48  ;;  %v3155_v56 = vadd.f32 %v2259_v53, %v2258_v50 }
 0x11f   :  { %v2189_v63 = vpop.f32.mrb[12].mxu0  ;;  %v2261_v0 = vpop.f32.mrb[12].mxu1 }
 0x120   :  { %v2190_v1 = vpop.f32.mrb[13].mxu0  ;;  %v2262_v3 = vpop.f32.mrb[13].mxu1 }
 0x121   :  { %v3161_v5 = vadd.f32 %v2190_v1, %v2189_v63  ;;  %v2192_v6 = vpop.f32.mrb[14].mxu0  ;;  %v3163_v7 = vadd.f32 %v2262_v3, %v2261_v0  ;;  %v2264_v12 = vpop.f32.mrb[14].mxu1 }
 0x122   :  { %v2193_v13 = vpop.f32.mrb[15].mxu0  ;;  %v2265_v14 = vpop.f32.mrb[15].mxu1 }
 0x123   :  { %v3165_v15 = vadd.f32 %v2193_v13, %v2192_v6  ;;  %v3167_v48 = vadd.f32 %v2265_v14, %v2264_v12 }
 0x127   :  { %v2195_v53 = vpop.f32.mrb[16].mxu0 }
 0x128   :  { %v2196_v62 = vpop.f32.mrb[17].mxu0 }
 0x129   :  { %v3173_v63 = vadd.f32 %v2196_v62, %v2195_v53  ;;  %v2198_v1 = vpop.f32.mrb[18].mxu0 }
 0x12a   :  { %v2199_v0 = vpop.f32.mrb[19].mxu0 }
 0x12b   :  { %v2200_v3 = vadd.f32 %v2199_v0, %v2198_v1 }
 0x12d   :  { %v530_v11 = vpack.c.bf16 %v2200_v3, %v3173_v63 }
 0x12f   :  { %v2201_v61 = vpop.f32.mrb[20].mxu0 }
 0x130   :  { %v2202_v6 = vpop.f32.mrb[21].mxu0 }
 0x131   :  { %v2203_v13 = vadd.f32 %v2202_v6, %v2201_v61  ;;  %v2204_v12 = vpop.f32.mrb[22].mxu0 }
 0x132   :  { %v2205_v14 = vpop.f32.mrb[23].mxu0 }
 0x133   :  { %v2206_v57 = vadd.f32 %v2205_v14, %v2204_v12 }
 0x135   :  { %v531_v10 = vpack.c.bf16 %v2206_v57, %v2203_v13 }
 0x137   :  { %v2207_v50 = vpop.f32.mrb[24].mxu0 }
 0x138   :  { %v2208_v60 = vpop.f32.mrb[25].mxu0 }
 0x139   :  { %v2209_v31 = vadd.f32 %v2208_v60, %v2207_v50  ;;  %v2210_v51 = vpop.f32.mrb[26].mxu0 }
 0x13a   :  { %v2211_v29 = vpop.f32.mrb[27].mxu0 }
 0x13b   :  { %v2212_v27 = vadd.f32 %v2211_v29, %v2210_v51 }
 0x13d   :  { %v532_v62 = vpack.c.bf16 %v2212_v27, %v2209_v31  ;;  %v3800_v27 = vpack.c.bf16 %v3129_v58, %v3125_v52  ;;  %v3802_v58 = vpack.c.bf16 %v3153_v55, %v3149_v16  ;;  %v3806_v16 = vpack.c.bf16 %v3155_v56, %v3151_v49  ;;  %v3814_v49 = vld [vmem:[#allocation14_spill] sm:$0xff] }
 0x13e   :  { %v3807_v55 = vpack.c.bf16 %v3167_v48, %v3163_v7 }
 0x13f   :  { %v2213_v53 = vpop.f32.mrb[28].mxu0 }
 0x140   :  { %v2214_v25 = vpop.f32.mrb[29].mxu0 }
 0x141   :  { %v2215_v23 = vadd.f32 %v2214_v25, %v2213_v53  ;;  %v2216_v1 = vpop.f32.mrb[30].mxu0 }
 0x142   :  { %v2217_v0 = vpop.f32.mrb[31].mxu0 }
 0x143   :  { %v2218_v63 = vadd.f32 %v2217_v0, %v2216_v1 }
 0x145   :  { %v533_v3 = vpack.c.bf16 %v2218_v63, %v2215_v23 }
 0x147   :  { %v2219_v21 = vpop.f32.mrb[32].mxu0 }
 0x148   :  { %v2220_v61 = vpop.f32.mrb[33].mxu0 }
 0x149   :  { %v2221_v6 = vadd.f32 %v2220_v61, %v2219_v21  ;;  %v2222_v19 = vpop.f32.mrb[34].mxu0  ;;  %v3801_v21 = vpack.c.bf16 %v3141_v8, %v3137_v2  ;;  %v3803_v2 = vpack.c.bf16 %v3165_v15, %v3161_v5  ;;  %v3804_v8 = vpack.c.bf16 %v3131_v59, %v3127_v54  ;;  %v3808_v54 = vld [vmem:[#allocation8_spill] sm:$0xff]  ;;  %v3809_v59 = vld [vmem:[#allocation9_spill] sm:$0xff] }
 0x14a   :  { %v2223_v12 = vpop.f32.mrb[35].mxu0 }
 0x14b   :  { %v2224_v57 = vadd.f32 %v2223_v12, %v2222_v19 }
 0x14d   :  { %v534_v13 = vpack.c.bf16 %v2224_v57, %v2221_v6 }
 0x14f   :  { %v2225_v14 = vpop.f32.mrb[36].mxu0  ;;  %2267 = vmatprep.subr.bf16.mxu1 %v534_v13 }
 0x150   :  { %v2226_v60 = vpop.f32.mrb[37].mxu0  ;;  %2268 = vmatpush3.bf16.msra.mxu1 %v3800_v27  ;;  %v3805_v27 = vpack.c.bf16 %v3143_v9, %v3139_v4  ;;  %v3810_v4 = vld [vmem:[#allocation10_spill] sm:$0xff]  ;;  %v3811_v9 = vld [vmem:[#allocation11_spill] sm:$0xff] }
 0x151   :  { %v2227_v29 = vadd.f32 %v2226_v60, %v2225_v14  ;;  %v2228_v25 = vpop.f32.mrb[38].mxu0 }
 0x152   :  { %v2229_v31 = vpop.f32.mrb[39].mxu0 }
 0x153   :  { %v2230_v50 = vadd.f32 %v2229_v31, %v2228_v25 }
 0x155   :  { %v535_v51 = vpack.c.bf16 %v2230_v50, %v2227_v29 }
 0x157   :  { %v2231_v23 = vpop.f32.mrb[40].mxu0  ;;  %2269 = vmatprep.subr.bf16.mxu1 %v535_v51 }
 0x158   :  { %v2232_v53 = vpop.f32.mrb[41].mxu0  ;;  %2270 = vmatpush3.bf16.msra.mxu1 %v3801_v21 }
 0x159   :  { %v2233_v19 = vadd.f32 %v2232_v53, %v2231_v23  ;;  %v2234_v1 = vpop.f32.mrb[42].mxu0 }
 0x15a   :  { %v2235_v0 = vpop.f32.mrb[43].mxu0 }
 0x15b   :  { %v2236_v63 = vadd.f32 %v2235_v0, %v2234_v1 }
 0x15d   :  { %v536_v61 = vpack.c.bf16 %v2236_v63, %v2233_v19 }
 0x15f   :  { %v2237_v6 = vpop.f32.mrb[44].mxu0  ;;  %2271 = vmatprep.subr.bf16.mxu1 %v536_v61 }
 0x160   :  { %v2238_v52 = vpop.f32.mrb[45].mxu0  ;;  %2272 = vmatpush3.bf16.msra.mxu1 %v3802_v58 }
 0x161   :  { %v2239_v12 = vadd.f32 %v2238_v52, %v2237_v6  ;;  %v2240_v57 = vpop.f32.mrb[46].mxu0 }
 0x162   :  { %v2241_v13 = vpop.f32.mrb[47].mxu0 }
 0x163   :  { %v2242_v14 = vadd.f32 %v2241_v13, %v2240_v57 }
 0x165   :  { %v537_v60 = vpack.c.bf16 %v2242_v14, %v2239_v12 }
 0x167   :  { %2273 = vmatprep.subr.bf16.mxu1 %v537_v60 }
 0x168   :  { %2274 = vmatpush3.bf16.msra.mxu1 %v3803_v2 }
 0x169   :  { %2275 = vmatprep.subr.bf16.mxu1 %v3804_v8 }
 0x16c   :  { %2276 = vmatpush3.bf16.msra.mxu1 %v530_v11  ;;  %v3813_v11 = vld [vmem:[#allocation13_spill] sm:$0xff] }
 0x16d   :  { %2277 = vmatprep.subr.bf16.mxu1 %v3805_v27 }
 0x170   :  { %2278 = vmatpush3.bf16.msra.mxu1 %v531_v10  ;;  %v3812_v10 = vld [vmem:[#allocation12_spill] sm:$0xff] }
 0x171   :  { %2279 = vmatprep.subr.bf16.mxu1 %v3806_v16 }
 0x174   :  { %2280 = vmatpush3.bf16.msra.mxu1 %v532_v62 }
 0x175   :  { %2281 = vmatprep.subr.bf16.mxu1 %v3807_v55 }
 0x178   :  { %2282 = vmatpush3.bf16.msra.mxu1 %v533_v3 }
 0x17b   :  { %575 = vmatmul.mubr.bf16.vlgmr.msra.gmra.mrb[16].mxu1 %v3030_v17 }
 0x17c   :  { %582 = vmatprep.mubr.bf16.mxu1 %v3036_v20 }
 0x183   :  { %583 = vmatmul.mubr.bf16.gmra.mrb[20].mxu1 %v3045_v22 }
 0x184   :  { %590 = vmatprep.mubr.bf16.mxu1 %v3049_v24 }
 0x18b   :  { %591 = vmatmul.mubr.bf16.gmra.mrb[24].mxu1 %v3057_v26 }
 0x18c   :  { %598 = vmatprep.mubr.bf16.mxu1 %v3061_v28 }
 0x193   :  { %599 = vmatmul.mubr.bf16.gmra.mrb[28].mxu1 %v3069_v30 }
 0x194   :  { %606 = vmatprep.mubr.bf16.mxu1 %v3073_v32 }
 0x19b   :  { %607 = vmatmul.mubr.bf16.gmra.mrb[32].mxu1 %v3079_v33 }
 0x19c   :  { %614 = vmatprep.mubr.bf16.mxu1 %v3081_v34 }
 0x1a3   :  { %615 = vmatmul.mubr.bf16.gmra.mrb[36].mxu1 %v3085_v35 }
 0x1a4   :  { %622 = vmatprep.mubr.bf16.mxu1 %v3087_v36 }
 0x1ab   :  { %623 = vmatmul.mubr.bf16.gmra.mrb[40].mxu1 %v3091_v37 }
 0x1ac   :  { %630 = vmatprep.mubr.bf16.mxu1 %v3093_v38 }
 0x1b3   :  { %631 = vmatmul.mubr.bf16.gmra.mrb[44].mxu1 %v3097_v39 }
 0x1b4   :  { %638 = vmatprep.mubr.bf16.mxu1 %v3099_v40 }
 0x1bb   :  { %639 = vmatmul.mubr.bf16.gmra.mrb[48].mxu1 %v3103_v41 }
 0x1bc   :  { %646 = vmatprep.mubr.bf16.mxu1 %v3105_v42 }
 0x1c3   :  { %647 = vmatmul.mubr.bf16.gmra.mrb[52].mxu1 %v3109_v43 }
 0x1c4   :  { %654 = vmatprep.mubr.bf16.mxu1 %v3111_v44 }
 0x1cb   :  { %655 = vmatmul.mubr.bf16.gmra.mrb[56].mxu1 %v3115_v45 }
 0x1cc   :  { %662 = vmatprep.mubr.bf16.mxu1 %v3117_v46 }
 0x1d3   :  { %663 = vmatmul.mubr.bf16.gmra.mrb[60].mxu1 %v3121_v47 }
 0x1d4   :  { %670 = vmatprep.mubr.bf16.mxu1 %v3032_v18 }
 0x1db   :  { %671 = vmatmul.mubr.bf16.gmra.mrb[64].mxu1 %v3808_v54 }
 0x1dc   :  { %678 = vmatprep.mubr.bf16.mxu1 %v3809_v59 }
 0x1e3   :  { %679 = vmatmul.mubr.bf16.gmra.mrb[68].mxu1 %v3810_v4 }
 0x1e4   :  { %686 = vmatprep.mubr.bf16.mxu1 %v3811_v9 }
 0x1eb   :  { %687 = vmatmul.mubr.bf16.gmra.mrb[72].mxu1 %v3812_v10 }
 0x1ec   :  { %694 = vmatprep.mubr.bf16.mxu1 %v3813_v11 }
 0x1f3   :  { %695 = vmatmul.mubr.bf16.gmra.mrb[76].mxu1 %v3814_v49 }
 0x24e   :  { %v2283_v56 = vpop.f32.mrb[16].mxu1 }
 0x24f   :  { %v2284_v5 = vpop.f32.mrb[17].mxu1 }
 0x250   :  { %v3231_v7 = vadd.f32 %v2284_v5, %v2283_v56  ;;  %v2286_v15 = vpop.f32.mrb[18].mxu1 }
 0x251   :  { %v2287_v48 = vpop.f32.mrb[19].mxu1 }
 0x252   :  { %v2288_v62 = vadd.f32 %v2287_v48, %v2286_v15 }
 0x254   :  { %v703_v3 = vpack.c.bf16 %v2288_v62, %v3231_v7 }
 0x256   :  { %v2289_v29 = vpop.f32.mrb[20].mxu1 }
 0x257   :  { %v2290_v25 = vpop.f32.mrb[21].mxu1 }
 0x258   :  { %v3234_v31 = vadd.f32 %v2290_v25, %v2289_v29  ;;  %v2292_v50 = vpop.f32.mrb[22].mxu1 }
 0x259   :  { %v2293_v51 = vpop.f32.mrb[23].mxu1 }
 0x25a   :  { %v3236_v23 = vadd.f32 %v2293_v51, %v2292_v50 }
 0x25c   :  { %v704_v53 = vpack.c.bf16 %v3236_v23, %v3234_v31 }
 0x25e   :  { %v2295_v21 = vpop.f32.mrb[24].mxu1 }
 0x25f   :  { %v2296_v19 = vpop.f32.mrb[25].mxu1 }
 0x260   :  { %v3240_v1 = vadd.f32 %v2296_v19, %v2295_v21  ;;  %v2298_v0 = vpop.f32.mrb[26].mxu1 }
 0x261   :  { %v2299_v63 = vpop.f32.mrb[27].mxu1 }
 0x262   :  { %v3242_v61 = vadd.f32 %v2299_v63, %v2298_v0 }
 0x266   :  { %v2301_v52 = vpop.f32.mrb[28].mxu1 }
 0x267   :  { %v2302_v58 = vpop.f32.mrb[29].mxu1 }
 0x268   :  { %v3246_v12 = vadd.f32 %v2302_v58, %v2301_v52  ;;  %v2304_v57 = vpop.f32.mrb[30].mxu1 }
 0x269   :  { %v2305_v13 = vpop.f32.mrb[31].mxu1 }
 0x26a   :  { %v3248_v14 = vadd.f32 %v2305_v13, %v2304_v57 }
 0x26e   :  { %v2307_v2 = vpop.f32.mrb[32].mxu1 }
 0x26f   :  { %v2308_v8 = vpop.f32.mrb[33].mxu1 }
 0x270   :  { %v3252_v27 = vadd.f32 %v2308_v8, %v2307_v2  ;;  %v2310_v16 = vpop.f32.mrb[34].mxu1 }
 0x271   :  { %v2311_v55 = vpop.f32.mrb[35].mxu1 }
 0x272   :  { %v3254_v56 = vadd.f32 %v2311_v55, %v2310_v16 }
 0x276   :  { %v2313_v7 = vpop.f32.mrb[36].mxu1 }
 0x277   :  { %v2314_v15 = vpop.f32.mrb[37].mxu1 }
 0x278   :  { %v3258_v48 = vadd.f32 %v2314_v15, %v2313_v7  ;;  %v2316_v62 = vpop.f32.mrb[38].mxu1 }
 0x279   :  { %v2317_v29 = vpop.f32.mrb[39].mxu1 }
 0x27a   :  { %v3260_v25 = vadd.f32 %v2317_v29, %v2316_v62 }
 0x27e   :  { %v2319_v50 = vpop.f32.mrb[40].mxu1 }
 0x27f   :  { %v2320_v51 = vpop.f32.mrb[41].mxu1 }
 0x280   :  { %v3264_v23 = vadd.f32 %v2320_v51, %v2319_v50  ;;  %v2322_v21 = vpop.f32.mrb[42].mxu1 }
 0x281   :  { %v2323_v19 = vpop.f32.mrb[43].mxu1 }
 0x282   :  { %v3266_v0 = vadd.f32 %v2323_v19, %v2322_v21 }
 0x286   :  { %v2325_v52 = vpop.f32.mrb[44].mxu1 }
 0x287   :  { %v2326_v58 = vpop.f32.mrb[45].mxu1 }
 0x288   :  { %v3270_v57 = vadd.f32 %v2326_v58, %v2325_v52  ;;  %v2328_v13 = vpop.f32.mrb[46].mxu1 }
 0x289   :  { %v2329_v2 = vpop.f32.mrb[47].mxu1 }
 0x28a   :  { %v3272_v8 = vadd.f32 %v2329_v2, %v2328_v13 }
 0x28e   :  { %v2331_v55 = vpop.f32.mrb[48].mxu1 }
 0x28f   :  { %v2332_v7 = vpop.f32.mrb[49].mxu1 }
 0x290   :  { %v2333_v15 = vadd.f32 %v2332_v7, %v2331_v55  ;;  %v2334_v62 = vpop.f32.mrb[50].mxu1 }
 0x291   :  { %v2335_v29 = vpop.f32.mrb[51].mxu1 }
 0x292   :  { %v2336_v50 = vadd.f32 %v2335_v29, %v2334_v62 }
 0x294   :  { %v711_v51 = vpack.c.bf16 %v2336_v50, %v2333_v15 }
 0x296   :  { %v2337_v21 = vpop.f32.mrb[52].mxu1  ;;  %2379 = vmatprep.subr.bf16.mxu0 %v711_v51 }
 0x297   :  { %v2338_v19 = vpop.f32.mrb[53].mxu1  ;;  %2380 = vmatpush3.bf16.msra.mxu0 %v703_v3  ;;  %v3815_v3 = vpack.c.bf16 %v3242_v61, %v3240_v1  ;;  %v3817_v61 = vpack.c.bf16 %v3254_v56, %v3252_v27  ;;  %v3819_v56 = vpack.c.bf16 %v3266_v0, %v3264_v23 }
 0x298   :  { %v2339_v52 = vadd.f32 %v2338_v19, %v2337_v21  ;;  %v2340_v58 = vpop.f32.mrb[54].mxu1 }
 0x299   :  { %v2341_v63 = vpop.f32.mrb[55].mxu1 }
 0x29a   :  { %v2342_v31 = vadd.f32 %v2341_v63, %v2340_v58 }
 0x29c   :  { %v712_v13 = vpack.c.bf16 %v2342_v31, %v2339_v52 }
 0x29e   :  { %v2343_v2 = vpop.f32.mrb[56].mxu1  ;;  %2381 = vmatprep.subr.bf16.mxu0 %v712_v13 }
 0x29f   :  { %v2344_v5 = vpop.f32.mrb[57].mxu1  ;;  %2382 = vmatpush3.bf16.msra.mxu0 %v704_v53 }
 0x2a0   :  { %v2345_v16 = vadd.f32 %v2344_v5, %v2343_v2  ;;  %v2346_v60 = vpop.f32.mrb[58].mxu1  ;;  %v3816_v5 = vpack.c.bf16 %v3248_v14, %v3246_v12  ;;  %v3818_v14 = vpack.c.bf16 %v3260_v25, %v3258_v48  ;;  %v2734_v48 = vld [vmem:[%s3772_s2] sm:$0xff]  }
 0x2a1   :  { %v2347_v55 = vpop.f32.mrb[59].mxu1  ;;  %2544 = vmatprep.subr.bf16.mxu1 %v2734_v48 }
 0x2a2   :  { %v2348_v7 = vadd.f32 %v2347_v55, %v2346_v60  ;;  %2545 = vmatpush3.bf16.msra.mxu1 %v2734_v48 }
 0x2a4   :  { %v713_v6 = vpack.c.bf16 %v2348_v7, %v2345_v16 }
 0x2a6   :  { %v2349_v62 = vpop.f32.mrb[60].mxu1  ;;  %2383 = vmatprep.subr.bf16.mxu0 %v713_v6 }
 0x2a7   :  { %v2350_v15 = vpop.f32.mrb[61].mxu1  ;;  %2384 = vmatpush3.bf16.msra.mxu0 %v3815_v3 }
 0x2a8   :  { %v2351_v29 = vadd.f32 %v2350_v15, %v2349_v62  ;;  %v2352_v50 = vpop.f32.mrb[62].mxu1 }
 0x2a9   :  { %v2353_v63 = vpop.f32.mrb[63].mxu1 }
 0x2aa   :  { %v2354_v31 = vadd.f32 %v2353_v63, %v2352_v50 }
 0x2ac   :  { %v714_v51 = vpack.c.bf16 %v2354_v31, %v2351_v29 }
 0x2ae   :  { %v2355_v21 = vpop.f32.mrb[64].mxu1  ;;  %2385 = vmatprep.subr.bf16.mxu0 %v714_v51 }
 0x2af   :  { %v2356_v53 = vpop.f32.mrb[65].mxu1  ;;  %2386 = vmatpush3.bf16.msra.mxu0 %v3816_v5 }
 0x2b0   :  { %v2357_v60 = vadd.f32 %v2356_v53, %v2355_v21  ;;  %v2358_v16 = vpop.f32.mrb[66].mxu1 }
 0x2b1   :  { %v2359_v6 = vpop.f32.mrb[67].mxu1 }
 0x2b2   :  { %v2360_v19 = vadd.f32 %v2359_v6, %v2358_v16  ;;  %v3820_v16 = vpack.c.bf16 %v3272_v8, %v3270_v57 }
 0x2b4   :  { %v715_v52 = vpack.c.bf16 %v2360_v19, %v2357_v60 }
 0x2b6   :  { %v2361_v58 = vpop.f32.mrb[68].mxu1  ;;  %2387 = vmatprep.subr.bf16.mxu0 %v715_v52 }
 0x2b7   :  { %v2362_v1 = vpop.f32.mrb[69].mxu1  ;;  %2388 = vmatpush3.bf16.msra.mxu0 %v3817_v61 }
 0x2b8   :  { %v2363_v13 = vadd.f32 %v2362_v1, %v2361_v58  ;;  %v2364_v2 = vpop.f32.mrb[70].mxu1 }
 0x2b9   :  { %v2365_v55 = vpop.f32.mrb[71].mxu1 }
 0x2ba   :  { %v2366_v7 = vadd.f32 %v2365_v55, %v2364_v2 }
 0x2bc   :  { %v716_v62 = vpack.c.bf16 %v2366_v7, %v2363_v13 }
 0x2be   :  { %v2367_v15 = vpop.f32.mrb[72].mxu1  ;;  %2389 = vmatprep.subr.bf16.mxu0 %v716_v62 }
 0x2bf   :  { %v2368_v12 = vpop.f32.mrb[73].mxu1  ;;  %2390 = vmatpush3.bf16.msra.mxu0 %v3818_v14 }
 0x2c0   :  { %v2369_v3 = vadd.f32 %v2368_v12, %v2367_v15  ;;  %v2370_v29 = vpop.f32.mrb[74].mxu1 }
 0x2c1   :  { %v2371_v50 = vpop.f32.mrb[75].mxu1 }
 0x2c2   :  { %v2372_v63 = vadd.f32 %v2371_v50, %v2370_v29 }
 0x2c4   :  { %v717_v31 = vpack.c.bf16 %v2372_v63, %v2369_v3 }
 0x2c6   :  { %v2373_v51 = vpop.f32.mrb[76].mxu1  ;;  %2391 = vmatprep.subr.bf16.mxu0 %v717_v31 }
 0x2c7   :  { %v2374_v27 = vpop.f32.mrb[77].mxu1  ;;  %2392 = vmatpush3.bf16.msra.mxu0 %v3819_v56 }
 0x2c8   :  { %v2375_v21 = vadd.f32 %v2374_v27, %v2373_v51  ;;  %v2376_v53 = vpop.f32.mrb[78].mxu1 }
 0x2c9   :  { %v2377_v5 = vpop.f32.mrb[79].mxu1 }
 0x2ca   :  { %v2378_v60 = vadd.f32 %v2377_v5, %v2376_v53 }
 0x2cc   :  { %v718_v25 = vpack.c.bf16 %v2378_v60, %v2375_v21 }
 0x2ce   :  { %2393 = vmatprep.subr.bf16.mxu0 %v718_v25 }
 0x2cf   :  { %2394 = vmatpush3.bf16.msra.mxu0 %v3820_v16 }
 0x2d2   :  { %752 = vmatmul.mubr.bf16.vlgmr.msra.gmra.mrb[48].mxu0 %v3030_v17 }
 0x2d3   :  { %759 = vmatprep.mubr.bf16.mxu0 %v3036_v20 }
 0x2da   :  { %760 = vmatmul.mubr.bf16.gmra.mrb[52].mxu0 %v3045_v22 }
 0x2db   :  { %767 = vmatprep.mubr.bf16.mxu0 %v3049_v24 }
 0x2e2   :  { %768 = vmatmul.mubr.bf16.gmra.mrb[56].mxu0 %v3057_v26 }
 0x2e3   :  { %775 = vmatprep.mubr.bf16.mxu0 %v3061_v28 }
 0x2ea   :  { %776 = vmatmul.mubr.bf16.gmra.mrb[60].mxu0 %v3069_v30 }
 0x2eb   :  { %783 = vmatprep.mubr.bf16.mxu0 %v3073_v32 }
 0x2f2   :  { %784 = vmatmul.mubr.bf16.gmra.mrb[64].mxu0 %v3079_v33 }
 0x2f3   :  { %791 = vmatprep.mubr.bf16.mxu0 %v3081_v34 }
 0x2fa   :  { %792 = vmatmul.mubr.bf16.gmra.mrb[68].mxu0 %v3085_v35 }
 0x2fb   :  { %799 = vmatprep.mubr.bf16.mxu0 %v3087_v36 }
 0x302   :  { %800 = vmatmul.mubr.bf16.gmra.mrb[72].mxu0 %v3091_v37 }
 0x303   :  { %807 = vmatprep.mubr.bf16.mxu0 %v3093_v38 }
 0x30a   :  { %808 = vmatmul.mubr.bf16.gmra.mrb[76].mxu0 %v3097_v39 }
 0x30b   :  { %815 = vmatprep.mubr.bf16.mxu0 %v3099_v40 }
 0x312   :  { %816 = vmatmul.mubr.bf16.gmra.mrb[80].mxu0 %v3103_v41 }
 0x313   :  { %823 = vmatprep.mubr.bf16.mxu0 %v3105_v42 }
 0x31a   :  { %824 = vmatmul.mubr.bf16.gmra.mrb[84].mxu0 %v3109_v43 }
 0x31b   :  { %831 = vmatprep.mubr.bf16.mxu0 %v3111_v44 }
 0x322   :  { %832 = vmatmul.mubr.bf16.gmra.mrb[88].mxu0 %v3115_v45 }
 0x323   :  { %839 = vmatprep.mubr.bf16.mxu0 %v3117_v46 }
 0x32a   :  { %840 = vmatmul.mubr.bf16.gmra.mrb[92].mxu0 %v3121_v47 }
 0x32b   :  { %847 = vmatprep.mubr.bf16.mxu0 %v3032_v18 }
 0x332   :  { %848 = vmatmul.mubr.bf16.gmra.mrb[96].mxu0 %v3808_v54 }
 0x333   :  { %855 = vmatprep.mubr.bf16.mxu0 %v3809_v59 }
 0x33a   :  { %856 = vmatmul.mubr.bf16.gmra.mrb[100].mxu0 %v3810_v4 }
 0x33b   :  { %863 = vmatprep.mubr.bf16.mxu0 %v3811_v9 }
 0x342   :  { %864 = vmatmul.mubr.bf16.gmra.mrb[104].mxu0 %v3812_v10 }
 0x343   :  { %871 = vmatprep.mubr.bf16.mxu0 %v3813_v11 }
 0x34a   :  { %872 = vmatmul.mubr.bf16.gmra.mrb[108].mxu0 %v3814_v49 }
 0x3a5   :  { %v2395_v17 = vpop.f32.mrb[48].mxu0 }
 0x3a6   :  { %v2396_v20 = vpop.f32.mrb[49].mxu0 }
 0x3a7   :  { %v2397_v22 = vadd.f32 %v2396_v20, %v2395_v17  ;;  %v2398_v24 = vpop.f32.mrb[50].mxu0 }
 0x3a8   :  { %v2399_v26 = vpop.f32.mrb[51].mxu0 }
 0x3a9   :  { %v2400_v18 = vadd.f32 %v2399_v26, %v2398_v24 }
 0x3ab   :  { %v880_v28 = vpack.c.bf16 %v2400_v18, %v2397_v22 }
 0x3ad   :  { %v2401_v30 = vpop.f32.mrb[52].mxu0  ;;  %2546 = vmatprep.mubr.msk.bf16.mxu1 %vm921_vm0, %v880_v28 }
 0x3ae   :  { %v2402_v32 = vpop.f32.mrb[53].mxu0 }
 0x3af   :  { %v2403_v33 = vadd.f32 %v2402_v32, %v2401_v30  ;;  %v2404_v34 = vpop.f32.mrb[54].mxu0 }
 0x3b0   :  { %v2405_v35 = vpop.f32.mrb[55].mxu0 }
 0x3b1   :  { %v2406_v36 = vadd.f32 %v2405_v35, %v2404_v34 }
 0x3b3   :  { %v881_v37 = vpack.c.bf16 %v2406_v36, %v2403_v33 }
 0x3b5   :  { %2547 = vmatmul.mubr.msk.bf16.vlgmr.msra.gmra.mrb[80].mxu1 %vm921_vm0, %v881_v37  ;;  %v2407_v38 = vpop.f32.mrb[56].mxu0 }
 0x3b6   :  { %v2408_v39 = vpop.f32.mrb[57].mxu0 }
 0x3b7   :  { %v2409_v40 = vadd.f32 %v2408_v39, %v2407_v38  ;;  %v2410_v41 = vpop.f32.mrb[58].mxu0 }
 0x3b8   :  { %v2411_v42 = vpop.f32.mrb[59].mxu0 }
 0x3b9   :  { %v2412_v43 = vadd.f32 %v2411_v42, %v2410_v41 }
 0x3bb   :  { %v882_v44 = vpack.c.bf16 %v2412_v43, %v2409_v40 }
 0x3bd   :  { %v2413_v45 = vpop.f32.mrb[60].mxu0  ;;  %2550 = vmatprep.mubr.msk.bf16.mxu1 %vm921_vm0, %v882_v44 }
 0x3be   :  { %v2414_v46 = vpop.f32.mrb[61].mxu0 }
 0x3bf   :  { %v2415_v47 = vadd.f32 %v2414_v46, %v2413_v45  ;;  %v2416_v54 = vpop.f32.mrb[62].mxu0 }
 0x3c0   :  { %v2417_v59 = vpop.f32.mrb[63].mxu0 }
 0x3c1   :  { %v2418_v4 = vadd.f32 %v2417_v59, %v2416_v54 }
 0x3c3   :  { %v883_v9 = vpack.c.bf16 %v2418_v4, %v2415_v47  ;;  %v2735_v4 = vld [vmem:[%s3774_s4] sm:$0xff]  }
 0x3c4   :  { %2578 = vmatprep.subr.bf16.mxu1 %v2735_v4 }
 0x3c5   :  { %2551 = vmatmul.mubr.msk.bf16.gmra.mrb[84].mxu1 %vm921_vm0, %v883_v9  ;;  %v2419_v10 = vpop.f32.mrb[64].mxu0 }
 0x3c6   :  { %v2420_v11 = vpop.f32.mrb[65].mxu0  ;;  %2579 = vmatpush3.bf16.msra.mxu1 %v2735_v4 }
 0x3c7   :  { %v2421_v49 = vadd.f32 %v2420_v11, %v2419_v10  ;;  %v2422_v23 = vpop.f32.mrb[66].mxu0  ;;  %v2736_v11 = vld [vmem:[%s3774_s4 + $0x8] sm:$0xff]  }
 0x3c8   :  { %v2423_v0 = vpop.f32.mrb[67].mxu0  ;;  %2580 = vmatprep.subr.bf16.mxu1 %v2736_v11 }
 0x3c9   :  { %v2424_v57 = vadd.f32 %v2423_v0, %v2422_v23 }
 0x3ca   :  { %2581 = vmatpush3.bf16.msra.mxu1 %v2736_v11 }
 0x3cb   :  { %v884_v8 = vpack.c.bf16 %v2424_v57, %v2421_v49 }
 0x3cd   :  { %v2425_v6 = vpop.f32.mrb[68].mxu0  ;;  %2554 = vmatprep.mubr.msk.bf16.mxu1 %vm921_vm0, %v884_v8 }
 0x3ce   :  { %v2426_v19 = vpop.f32.mrb[69].mxu0 }
 0x3cf   :  { %v2427_v52 = vadd.f32 %v2426_v19, %v2425_v6  ;;  %v2428_v58 = vpop.f32.mrb[70].mxu0 }
 0x3d0   :  { %v2429_v1 = vpop.f32.mrb[71].mxu0 }
 0x3d1   :  { %v2430_v61 = vadd.f32 %v2429_v1, %v2428_v58 }
 0x3d3   :  { %v885_v13 = vpack.c.bf16 %v2430_v61, %v2427_v52 }
 0x3d5   :  { %2555 = vmatmul.mubr.msk.bf16.gmra.mrb[88].mxu1 %vm921_vm0, %v885_v13  ;;  %v2431_v2 = vpop.f32.mrb[72].mxu0 }
 0x3d6   :  { %v2432_v55 = vpop.f32.mrb[73].mxu0 }
 0x3d7   :  { %v2433_v7 = vadd.f32 %v2432_v55, %v2431_v2  ;;  %v2434_v62 = vpop.f32.mrb[74].mxu0 }
 0x3d8   :  { %v2435_v15 = vpop.f32.mrb[75].mxu0 }
 0x3d9   :  { %v2436_v12 = vadd.f32 %v2435_v15, %v2434_v62 }
 0x3db   :  { %v886_v14 = vpack.c.bf16 %v2436_v12, %v2433_v7 }
 0x3dd   :  { %v2437_v3 = vpop.f32.mrb[76].mxu0  ;;  %2558 = vmatprep.mubr.msk.bf16.mxu1 %vm921_vm0, %v886_v14 }
 0x3de   :  { %v2438_v29 = vpop.f32.mrb[77].mxu0 }
 0x3df   :  { %v2439_v50 = vadd.f32 %v2438_v29, %v2437_v3  ;;  %v2440_v63 = vpop.f32.mrb[78].mxu0  ;;  %v2737_v29 = vld [vmem:[%s3776_s6] sm:$0xff]  }
 0x3e0   :  { %v2441_v31 = vpop.f32.mrb[79].mxu0  ;;  %2614 = vmatprep.subr.bf16.mxu0 %v2737_v29 }
 0x3e1   :  { %v2442_v51 = vadd.f32 %v2441_v31, %v2440_v63  ;;  %2615 = vmatpush3.bf16.msra.mxu0 %v2737_v29 }
 0x3e3   :  { %v887_v27 = vpack.c.bf16 %v2442_v51, %v2439_v50  ;;  %v3356_v50 = vld [vmem:[%s3773_s3] ss:$0 sm:$0xff] }
 0x3e5   :  { %2559 = vmatmul.mubr.msk.bf16.gmra.mrb[92].mxu1 %vm921_vm0, %v887_v27  ;;  %v2443_v56 = vpop.f32.mrb[80].mxu0 }
 0x3e6   :  { %v2444_v21 = vpop.f32.mrb[81].mxu0 }
 0x3e7   :  { %v2445_v53 = vadd.f32 %v2444_v21, %v2443_v56  ;;  %v2446_v5 = vpop.f32.mrb[82].mxu0 }
 0x3e8   :  { %v2447_v60 = vpop.f32.mrb[83].mxu0 }
 0x3e9   :  { %v2448_v48 = vadd.f32 %v2447_v60, %v2446_v5 }
 0x3eb   :  { %v888_v25 = vpack.c.bf16 %v2448_v48, %v2445_v53 }
 0x3ed   :  { %v2449_v16 = vpop.f32.mrb[84].mxu0  ;;  %2562 = vmatprep.mubr.msk.bf16.mxu1 %vm921_vm0, %v888_v25 }
 0x3ee   :  { %v2450_v17 = vpop.f32.mrb[85].mxu0 }
 0x3ef   :  { %v2451_v20 = vadd.f32 %v2450_v17, %v2449_v16  ;;  %v2452_v22 = vpop.f32.mrb[86].mxu0 }
 0x3f0   :  { %v2453_v24 = vpop.f32.mrb[87].mxu0 }
 0x3f1   :  { %v2454_v26 = vadd.f32 %v2453_v24, %v2452_v22 }
 0x3f3   :  { %v889_v18 = vpack.c.bf16 %v2454_v26, %v2451_v20 }
 0x3f5   :  { %2563 = vmatmul.mubr.msk.bf16.gmra.mrb[96].mxu1 %vm921_vm0, %v889_v18  ;;  %v2455_v28 = vpop.f32.mrb[88].mxu0 }
 0x3f6   :  { %v2456_v30 = vpop.f32.mrb[89].mxu0 }
 0x3f7   :  { %v2457_v32 = vadd.f32 %v2456_v30, %v2455_v28  ;;  %v2458_v33 = vpop.f32.mrb[90].mxu0 }
 0x3f8   :  { %v2459_v34 = vpop.f32.mrb[91].mxu0 }
 0x3f9   :  { %v2460_v35 = vadd.f32 %v2459_v34, %v2458_v33 }
 0x3fb   :  { %v890_v36 = vpack.c.bf16 %v2460_v35, %v2457_v32 }
 0x3fd   :  { %v2461_v37 = vpop.f32.mrb[92].mxu0  ;;  %2566 = vmatprep.mubr.msk.bf16.mxu1 %vm921_vm0, %v890_v36 }
 0x3fe   :  { %v2462_v38 = vpop.f32.mrb[93].mxu0 }
 0x3ff   :  { %v2463_v39 = vadd.f32 %v2462_v38, %v2461_v37  ;;  %v2464_v40 = vpop.f32.mrb[94].mxu0 }
 0x400   :  { %v2465_v41 = vpop.f32.mrb[95].mxu0 }
 0x401   :  { %v2466_v42 = vadd.f32 %v2465_v41, %v2464_v40 }
 0x403   :  { %v891_v43 = vpack.c.bf16 %v2466_v42, %v2463_v39 }
 0x405   :  { %2567 = vmatmul.mubr.msk.bf16.gmra.mrb[100].mxu1 %vm921_vm0, %v891_v43  ;;  %v2467_v44 = vpop.f32.mrb[96].mxu0 }
 0x406   :  { %v2468_v45 = vpop.f32.mrb[97].mxu0 }
 0x407   :  { %v2469_v46 = vadd.f32 %v2468_v45, %v2467_v44  ;;  %v2470_v47 = vpop.f32.mrb[98].mxu0 }
 0x408   :  { %v2471_v54 = vpop.f32.mrb[99].mxu0 }
 0x409   :  { %v2472_v59 = vadd.f32 %v2471_v54, %v2470_v47 }
 0x40b   :  { %v892_v9 = vpack.c.bf16 %v2472_v59, %v2469_v46 }
 0x40d   :  { %v2473_v10 = vpop.f32.mrb[100].mxu0  ;;  %2570 = vmatprep.mubr.msk.bf16.mxu1 %vm921_vm0, %v892_v9 }
 0x40e   :  { %v2474_v49 = vpop.f32.mrb[101].mxu0 }
 0x40f   :  { %v2475_v23 = vadd.f32 %v2474_v49, %v2473_v10  ;;  %v2476_v0 = vpop.f32.mrb[102].mxu0 }
 0x410   :  { %v2477_v57 = vpop.f32.mrb[103].mxu0 }
 0x411   :  { %v2478_v8 = vadd.f32 %v2477_v57, %v2476_v0 }
 0x413   :  { %v893_v6 = vpack.c.bf16 %v2478_v8, %v2475_v23 }
 0x415   :  { %2571 = vmatmul.mubr.msk.bf16.gmra.mrb[104].mxu1 %vm921_vm0, %v893_v6  ;;  %v2479_v19 = vpop.f32.mrb[104].mxu0 }
 0x416   :  { %v2480_v52 = vpop.f32.mrb[105].mxu0 }
 0x417   :  { %v2481_v58 = vadd.f32 %v2480_v52, %v2479_v19  ;;  %v2482_v1 = vpop.f32.mrb[106].mxu0 }
 0x418   :  { %v2483_v61 = vpop.f32.mrb[107].mxu0 }
 0x419   :  { %v2484_v13 = vadd.f32 %v2483_v61, %v2482_v1 }
 0x41b   :  { %v894_v2 = vpack.c.bf16 %v2484_v13, %v2481_v58 }
 0x41d   :  { %v2485_v55 = vpop.f32.mrb[108].mxu0  ;;  %2574 = vmatprep.mubr.msk.bf16.mxu1 %vm921_vm0, %v894_v2 }
 0x41e   :  { %v2486_v7 = vpop.f32.mrb[109].mxu0 }
 0x41f   :  { %v2487_v62 = vadd.f32 %v2486_v7, %v2485_v55  ;;  %v2488_v15 = vpop.f32.mrb[110].mxu0 }
 0x420   :  { %v2489_v12 = vpop.f32.mrb[111].mxu0 }
 0x421   :  { %v2490_v14 = vadd.f32 %v2489_v12, %v2488_v15 }
 0x423   :  { %v895_v3 = vpack.c.bf16 %v2490_v14, %v2487_v62 }
 0x425   :  { %2575 = vmatmul.mubr.msk.bf16.gmra.mrb[108].mxu1 %vm921_vm0, %v895_v3 }
 0x488   :  { %v2548_v63 = vpop.f32.mrb[80].mxu1 }
 0x489   :  { %v1013_v31 = vadd.f32 %v2548_v63, %v3356_v50  ;;  %v1004_v51 = vpop.f32.mrb[81].mxu1 }
 0x48a   :  { %v1005_v27 = vadd.f32 %v3356_v50, %v1004_v51  ;;  %v2549_v56 = vpop.f32.mrb[82].mxu1 }
 0x48b   :  { %v1016_v21 = vadd.f32 %v2549_v56, %v3356_v50  ;;  %v1007_v53 = vpop.f32.mrb[83].mxu1  ;;  %v1133_v60 = vmax.f32 %v1013_v31, 0.0 }
 0x48c   :  { %v1008_v5 = vadd.f32 %v3356_v50, %v1007_v53  ;;  %v1131_v25 = vmax.f32 %v1005_v27, 0.0 }
 0x48d   :  { %v1134_v48 = vmax.f32 %v1016_v21, 0.0 }
 0x48e   :  { %v1132_v16 = vmax.f32 %v1008_v5, 0.0 }
 0x48f   :  { %v1164_v17 = vpack.c.bf16 %v1134_v48, %v1133_v60 }
 0x490   :  { %v1163_v20 = vpack.c.bf16 %v1132_v16, %v1131_v25 }
 0x492   :  { %2582 = vmatprep.mubr.msk.bf16.mxu1 %vm1197_vm1, %v1163_v20 }
 0x493   :  { %2583 = vmatmul.mubr.msk.bf16.vlgmr.msra.gmra.mrb[112].mxu1 %vm1197_vm1, %v1164_v17 }
 0x498   :  { %v2552_v22 = vpop.f32.mrb[84].mxu1 }
 0x499   :  { %v1029_v24 = vadd.f32 %v2552_v22, %v3356_v50  ;;  %v1020_v26 = vpop.f32.mrb[85].mxu1 }
 0x49a   :  { %v1021_v18 = vadd.f32 %v3356_v50, %v1020_v26  ;;  %v2553_v28 = vpop.f32.mrb[86].mxu1 }
 0x49b   :  { %v1032_v30 = vadd.f32 %v2553_v28, %v3356_v50  ;;  %v1023_v32 = vpop.f32.mrb[87].mxu1  ;;  %v1137_v34 = vmax.f32 %v1029_v24, 0.0 }
 0x49c   :  { %v1024_v33 = vadd.f32 %v3356_v50, %v1023_v32  ;;  %v1135_v36 = vmax.f32 %v1021_v18, 0.0 }
 0x49d   :  { %v1138_v35 = vmax.f32 %v1032_v30, 0.0 }
 0x49e   :  { %v1136_v37 = vmax.f32 %v1024_v33, 0.0 }
 0x49f   :  { %v1166_v38 = vpack.c.bf16 %v1138_v35, %v1137_v34 }
 0x4a0   :  { %v1165_v39 = vpack.c.bf16 %v1136_v37, %v1135_v36 }
 0x4a2   :  { %2586 = vmatprep.mubr.msk.bf16.mxu1 %vm1197_vm1, %v1165_v39 }
 0x4a3   :  { %2587 = vmatmul.mubr.msk.bf16.gmra.mrb[116].mxu1 %vm1197_vm1, %v1166_v38 }
 0x4a8   :  { %v2556_v40 = vpop.f32.mrb[88].mxu1 }
 0x4a9   :  { %v1045_v41 = vadd.f32 %v2556_v40, %v3356_v50  ;;  %v1036_v42 = vpop.f32.mrb[89].mxu1  ;;  %v2738_v40 = vld [vmem:[%s3776_s6 + $0x8] sm:$0xff]  }
 0x4aa   :  { %v1037_v43 = vadd.f32 %v3356_v50, %v1036_v42  ;;  %v2557_v44 = vpop.f32.mrb[90].mxu1  ;;  %2616 = vmatprep.subr.bf16.mxu0 %v2738_v40 }
 0x4ab   :  { %v1048_v45 = vadd.f32 %v2557_v44, %v3356_v50  ;;  %v1039_v46 = vpop.f32.mrb[91].mxu1  ;;  %v1141_v54 = vmax.f32 %v1045_v41, 0.0  ;;  %2617 = vmatpush3.bf16.msra.mxu0 %v2738_v40 }
 0x4ac   :  { %v1040_v47 = vadd.f32 %v3356_v50, %v1039_v46  ;;  %v1139_v4 = vmax.f32 %v1037_v43, 0.0 }
 0x4ad   :  { %v1142_v59 = vmax.f32 %v1048_v45, 0.0 }
 0x4ae   :  { %v1140_v9 = vmax.f32 %v1040_v47, 0.0 }
 0x4af   :  { %v1168_v10 = vpack.c.bf16 %v1142_v59, %v1141_v54 }
 0x4b0   :  { %v1167_v11 = vpack.c.bf16 %v1140_v9, %v1139_v4 }
 0x4b2   :  { %2590 = vmatprep.mubr.msk.bf16.mxu1 %vm1197_vm1, %v1167_v11 }
 0x4b3   :  { %2591 = vmatmul.mubr.msk.bf16.gmra.mrb[120].mxu1 %vm1197_vm1, %v1168_v10 }
 0x4b8   :  { %v2560_v49 = vpop.f32.mrb[92].mxu1 }
 0x4b9   :  { %v1061_v23 = vadd.f32 %v2560_v49, %v3356_v50  ;;  %v1052_v0 = vpop.f32.mrb[93].mxu1 }
 0x4ba   :  { %v1053_v57 = vadd.f32 %v3356_v50, %v1052_v0  ;;  %v2561_v8 = vpop.f32.mrb[94].mxu1 }
 0x4bb   :  { %v1064_v6 = vadd.f32 %v2561_v8, %v3356_v50  ;;  %v1055_v19 = vpop.f32.mrb[95].mxu1  ;;  %v1145_v58 = vmax.f32 %v1061_v23, 0.0 }
 0x4bc   :  { %v1056_v52 = vadd.f32 %v3356_v50, %v1055_v19  ;;  %v1143_v61 = vmax.f32 %v1053_v57, 0.0 }
 0x4bd   :  { %v1146_v1 = vmax.f32 %v1064_v6, 0.0 }
 0x4be   :  { %v1144_v13 = vmax.f32 %v1056_v52, 0.0 }
 0x4bf   :  { %v1170_v2 = vpack.c.bf16 %v1146_v1, %v1145_v58  ;;  %v3412_v58 = vld [vmem:[%s3775_s5] ss:$0 sm:$0xff] }
 0x4c0   :  { %v1169_v55 = vpack.c.bf16 %v1144_v13, %v1143_v61 }
 0x4c2   :  { %2594 = vmatprep.mubr.msk.bf16.mxu1 %vm1197_vm1, %v1169_v55 }
 0x4c3   :  { %2595 = vmatmul.mubr.msk.bf16.gmra.mrb[124].mxu1 %vm1197_vm1, %v1170_v2 }
 0x4c8   :  { %v2564_v7 = vpop.f32.mrb[96].mxu1 }
 0x4c9   :  { %v1077_v62 = vadd.f32 %v2564_v7, %v3356_v50  ;;  %v1068_v15 = vpop.f32.mrb[97].mxu1 }
 0x4ca   :  { %v1069_v12 = vadd.f32 %v3356_v50, %v1068_v15  ;;  %v2565_v14 = vpop.f32.mrb[98].mxu1 }
 0x4cb   :  { %v1080_v3 = vadd.f32 %v2565_v14, %v3356_v50  ;;  %v1071_v29 = vpop.f32.mrb[99].mxu1  ;;  %v1149_v31 = vmax.f32 %v1077_v62, 0.0 }
 0x4cc   :  { %v1072_v63 = vadd.f32 %v3356_v50, %v1071_v29  ;;  %v1147_v27 = vmax.f32 %v1069_v12, 0.0 }
 0x4cd   :  { %v1150_v51 = vmax.f32 %v1080_v3, 0.0 }
 0x4ce   :  { %v1148_v56 = vmax.f32 %v1072_v63, 0.0 }
 0x4cf   :  { %v1172_v21 = vpack.c.bf16 %v1150_v51, %v1149_v31 }
 0x4d0   :  { %v1171_v53 = vpack.c.bf16 %v1148_v56, %v1147_v27 }
 0x4d2   :  { %2598 = vmatprep.mubr.msk.bf16.mxu1 %vm1197_vm1, %v1171_v53 }
 0x4d3   :  { %2599 = vmatmul.mubr.msk.bf16.gmra.mrb[128].mxu1 %vm1197_vm1, %v1172_v21 }
 0x4d8   :  { %v2568_v5 = vpop.f32.mrb[100].mxu1 }
 0x4d9   :  { %v1093_v60 = vadd.f32 %v2568_v5, %v3356_v50  ;;  %v1084_v48 = vpop.f32.mrb[101].mxu1 }
 0x4da   :  { %v1085_v25 = vadd.f32 %v3356_v50, %v1084_v48  ;;  %v2569_v16 = vpop.f32.mrb[102].mxu1 }
 0x4db   :  { %v1096_v17 = vadd.f32 %v2569_v16, %v3356_v50  ;;  %v1087_v20 = vpop.f32.mrb[103].mxu1  ;;  %v1153_v24 = vmax.f32 %v1093_v60, 0.0 }
 0x4dc   :  { %v1088_v22 = vadd.f32 %v3356_v50, %v1087_v20  ;;  %v1151_v18 = vmax.f32 %v1085_v25, 0.0 }
 0x4dd   :  { %v1154_v26 = vmax.f32 %v1096_v17, 0.0 }
 0x4de   :  { %v1152_v28 = vmax.f32 %v1088_v22, 0.0 }
 0x4df   :  { %v1174_v30 = vpack.c.bf16 %v1154_v26, %v1153_v24 }
 0x4e0   :  { %v1173_v32 = vpack.c.bf16 %v1152_v28, %v1151_v18 }
 0x4e2   :  { %2602 = vmatprep.mubr.msk.bf16.mxu1 %vm1197_vm1, %v1173_v32 }
 0x4e3   :  { %2603 = vmatmul.mubr.msk.bf16.gmra.mrb[132].mxu1 %vm1197_vm1, %v1174_v30 }
 0x4e8   :  { %v2572_v33 = vpop.f32.mrb[104].mxu1 }
 0x4e9   :  { %v1109_v34 = vadd.f32 %v2572_v33, %v3356_v50  ;;  %v1100_v35 = vpop.f32.mrb[105].mxu1 }
 0x4ea   :  { %v1101_v36 = vadd.f32 %v3356_v50, %v1100_v35  ;;  %v2573_v37 = vpop.f32.mrb[106].mxu1 }
 0x4eb   :  { %v1112_v38 = vadd.f32 %v2573_v37, %v3356_v50  ;;  %v1103_v39 = vpop.f32.mrb[107].mxu1  ;;  %v1157_v42 = vmax.f32 %v1109_v34, 0.0 }
 0x4ec   :  { %v1104_v41 = vadd.f32 %v3356_v50, %v1103_v39  ;;  %v1155_v44 = vmax.f32 %v1101_v36, 0.0 }
 0x4ed   :  { %v1158_v43 = vmax.f32 %v1112_v38, 0.0 }
 0x4ee   :  { %v1156_v45 = vmax.f32 %v1104_v41, 0.0 }
 0x4ef   :  { %v1176_v46 = vpack.c.bf16 %v1158_v43, %v1157_v42 }
 0x4f0   :  { %v1175_v47 = vpack.c.bf16 %v1156_v45, %v1155_v44 }
 0x4f2   :  { %2606 = vmatprep.mubr.msk.bf16.mxu1 %vm1197_vm1, %v1175_v47 }
 0x4f3   :  { %2607 = vmatmul.mubr.msk.bf16.gmra.mrb[136].mxu1 %vm1197_vm1, %v1176_v46 }
 0x4f8   :  { %v2576_v54 = vpop.f32.mrb[108].mxu1 }
 0x4f9   :  { %v1125_v59 = vadd.f32 %v2576_v54, %v3356_v50  ;;  %v1116_v4 = vpop.f32.mrb[109].mxu1 }
 0x4fa   :  { %v1117_v9 = vadd.f32 %v3356_v50, %v1116_v4  ;;  %v2577_v10 = vpop.f32.mrb[110].mxu1 }
 0x4fb   :  { %v1128_v11 = vadd.f32 %v2577_v10, %v3356_v50  ;;  %v1119_v49 = vpop.f32.mrb[111].mxu1  ;;  %v1161_v0 = vmax.f32 %v1125_v59, 0.0 }
 0x4fc   :  { %v1120_v23 = vadd.f32 %v3356_v50, %v1119_v49  ;;  %v1159_v8 = vmax.f32 %v1117_v9, 0.0 }
 0x4fd   :  { %v1162_v57 = vmax.f32 %v1128_v11, 0.0 }
 0x4fe   :  { %v1160_v6 = vmax.f32 %v1120_v23, 0.0 }
 0x4ff   :  { %v1178_v19 = vpack.c.bf16 %v1162_v57, %v1161_v0 }
 0x500   :  { %v1177_v52 = vpack.c.bf16 %v1160_v6, %v1159_v8 }
 0x502   :  { %2610 = vmatprep.mubr.msk.bf16.mxu1 %vm1197_vm1, %v1177_v52 }
 0x503   :  { %2611 = vmatmul.mubr.msk.bf16.gmra.mrb[140].mxu1 %vm1197_vm1, %v1178_v19 }
 0x566   :  { %v2584_v1 = vpop.f32.mrb[112].mxu1 }
 0x567   :  { %v1289_v61 = vadd.f32 %v2584_v1, %v3412_v58  ;;  %v1280_v13 = vpop.f32.mrb[113].mxu1 }
 0x568   :  { %v1281_v50 = vadd.f32 %v3412_v58, %v1280_v13  ;;  %v2585_v2 = vpop.f32.mrb[114].mxu1 }
 0x569   :  { %v1292_v55 = vadd.f32 %v2585_v2, %v3412_v58  ;;  %v1283_v7 = vpop.f32.mrb[115].mxu1  ;;  %v1409_v15 = vmax.f32 %v1289_v61, 0.0 }
 0x56a   :  { %v1284_v62 = vadd.f32 %v3412_v58, %v1283_v7  ;;  %v1407_v14 = vmax.f32 %v1281_v50, 0.0 }
 0x56b   :  { %v1410_v12 = vmax.f32 %v1292_v55, 0.0 }
 0x56c   :  { %v1408_v3 = vmax.f32 %v1284_v62, 0.0 }
 0x56d   :  { %v1440_v29 = vpack.c.bf16 %v1410_v12, %v1409_v15 }
 0x56e   :  { %v1439_v63 = vpack.c.bf16 %v1408_v3, %v1407_v14 }
 0x570   :  { %2618 = vmatprep.mubr.msk.bf16.mxu0 %vm1197_vm1, %v1439_v63 }
 0x571   :  { %2619 = vmatmul.mubr.msk.bf16.vlgmr.msra.gmra.mrb[112].mxu0 %vm1197_vm1, %v1440_v29 }
 0x576   :  { %v2588_v31 = vpop.f32.mrb[116].mxu1 }
 0x577   :  { %v1305_v51 = vadd.f32 %v2588_v31, %v3412_v58  ;;  %v1296_v27 = vpop.f32.mrb[117].mxu1 }
 0x578   :  { %v1297_v56 = vadd.f32 %v3412_v58, %v1296_v27  ;;  %v2589_v21 = vpop.f32.mrb[118].mxu1 }
 0x579   :  { %v1308_v53 = vadd.f32 %v2589_v21, %v3412_v58  ;;  %v1299_v5 = vpop.f32.mrb[119].mxu1  ;;  %v1413_v48 = vmax.f32 %v1305_v51, 0.0 }
 0x57a   :  { %v1300_v60 = vadd.f32 %v3412_v58, %v1299_v5  ;;  %v1411_v16 = vmax.f32 %v1297_v56, 0.0 }
 0x57b   :  { %v1414_v25 = vmax.f32 %v1308_v53, 0.0 }
 0x57c   :  { %v1412_v17 = vmax.f32 %v1300_v60, 0.0 }
 0x57d   :  { %v1442_v20 = vpack.c.bf16 %v1414_v25, %v1413_v48 }
 0x57e   :  { %v1441_v22 = vpack.c.bf16 %v1412_v17, %v1411_v16 }
 0x580   :  { %2622 = vmatprep.mubr.msk.bf16.mxu0 %vm1197_vm1, %v1441_v22 }
 0x581   :  { %2623 = vmatmul.mubr.msk.bf16.gmra.mrb[116].mxu0 %vm1197_vm1, %v1442_v20 }
 0x586   :  { %v2592_v24 = vpop.f32.mrb[120].mxu1 }
 0x587   :  { %v1321_v26 = vadd.f32 %v2592_v24, %v3412_v58  ;;  %v1312_v18 = vpop.f32.mrb[121].mxu1 }
 0x588   :  { %v1313_v28 = vadd.f32 %v3412_v58, %v1312_v18  ;;  %v2593_v30 = vpop.f32.mrb[122].mxu1 }
 0x589   :  { %v1324_v32 = vadd.f32 %v2593_v30, %v3412_v58  ;;  %v1315_v33 = vpop.f32.mrb[123].mxu1  ;;  %v1417_v35 = vmax.f32 %v1321_v26, 0.0 }
 0x58a   :  { %v1316_v34 = vadd.f32 %v3412_v58, %v1315_v33  ;;  %v1415_v37 = vmax.f32 %v1313_v28, 0.0 }
 0x58b   :  { %v1418_v36 = vmax.f32 %v1324_v32, 0.0 }
 0x58c   :  { %v1416_v38 = vmax.f32 %v1316_v34, 0.0 }
 0x58d   :  { %v1444_v39 = vpack.c.bf16 %v1418_v36, %v1417_v35 }
 0x58e   :  { %v1443_v40 = vpack.c.bf16 %v1416_v38, %v1415_v37 }
 0x590   :  { %2626 = vmatprep.mubr.msk.bf16.mxu0 %vm1197_vm1, %v1443_v40 }
 0x591   :  { %2627 = vmatmul.mubr.msk.bf16.gmra.mrb[120].mxu0 %vm1197_vm1, %v1444_v39 }
 0x596   :  { %v2596_v41 = vpop.f32.mrb[124].mxu1 }
 0x597   :  { %v1337_v42 = vadd.f32 %v2596_v41, %v3412_v58  ;;  %v1328_v43 = vpop.f32.mrb[125].mxu1 }
 0x598   :  { %v1329_v44 = vadd.f32 %v3412_v58, %v1328_v43  ;;  %v2597_v45 = vpop.f32.mrb[126].mxu1 }
 0x599   :  { %v1340_v46 = vadd.f32 %v2597_v45, %v3412_v58  ;;  %v1331_v47 = vpop.f32.mrb[127].mxu1  ;;  %v1421_v59 = vmax.f32 %v1337_v42, 0.0 }
 0x59a   :  { %v1332_v54 = vadd.f32 %v3412_v58, %v1331_v47  ;;  %v1419_v9 = vmax.f32 %v1329_v44, 0.0 }
 0x59b   :  { %v1422_v4 = vmax.f32 %v1340_v46, 0.0 }
 0x59c   :  { %v1420_v10 = vmax.f32 %v1332_v54, 0.0  ;;  %v3465_v54 = vld [vmem:[%s3777_s7] ss:$0 sm:$0xff]  ;;  %s2918_s7 = smov [#allocation5]  }
 0x59d   :  { %v1446_v11 = vpack.c.bf16 %v1422_v4, %v1421_v59  ;;  %s2039_s19 = sshll.u32 %s2918_s7, 4  ;;  %s2040_s19 = int_to_ptr.vmem [resolvable:$true] %s2039_s19 }
 0x59e   :  { %v1445_v49 = vpack.c.bf16 %v1420_v10, %v1419_v9  ;;  %s2889_s20 = scalar_lea.vmem %s2040_s19, 4096  ;;  %p2894_p9 = scmp.lt.s32.totalorder %s2040_s19, %s2040_s19 }
 0x59f   :  { %p2890_p8 = scmp.ne.s32.totalorder %s2040_s19, %s2889_s20  ;;  %p2895_p10 = scmp.lt.s32.totalorder %s2889_s20, %s2889_s20 }
 0x5a0   :  { %2630 = vmatprep.mubr.msk.bf16.mxu0 %vm1197_vm1, %v1445_v49 }
 0x5a1   :  { %2631 = vmatmul.mubr.msk.bf16.gmra.mrb[124].mxu0 %vm1197_vm1, %v1446_v11  ;;  %p2896_p11 = por %p2895_p10, %p2894_p9 }
 0x5a3   :  { %p2897_p12 = pnand %p2896_p11, %p2890_p8 }
 0x5a6   :  { %v2600_v23 = vpop.f32.mrb[128].mxu1 }
 0x5a7   :  { %v1353_v0 = vadd.f32 %v2600_v23, %v3412_v58  ;;  %v1344_v57 = vpop.f32.mrb[129].mxu1 }
 0x5a8   :  { %v1345_v8 = vadd.f32 %v3412_v58, %v1344_v57  ;;  %v2601_v6 = vpop.f32.mrb[130].mxu1 }
 0x5a9   :  { %v1356_v19 = vadd.f32 %v2601_v6, %v3412_v58  ;;  %v1347_v52 = vpop.f32.mrb[131].mxu1  ;;  %v1425_v61 = vmax.f32 %v1353_v0, 0.0 }
 0x5aa   :  { %v1348_v1 = vadd.f32 %v3412_v58, %v1347_v52  ;;  %v1423_v50 = vmax.f32 %v1345_v8, 0.0 }
 0x5ab   :  { %v1426_v13 = vmax.f32 %v1356_v19, 0.0 }
 0x5ac   :  { %v1424_v2 = vmax.f32 %v1348_v1, 0.0 }
 0x5ad   :  { %v1448_v55 = vpack.c.bf16 %v1426_v13, %v1425_v61 }
 0x5ae   :  { %v1447_v7 = vpack.c.bf16 %v1424_v2, %v1423_v50 }
 0x5b0   :  { %2634 = vmatprep.mubr.msk.bf16.mxu0 %vm1197_vm1, %v1447_v7 }
 0x5b1   :  { %2635 = vmatmul.mubr.msk.bf16.gmra.mrb[128].mxu0 %vm1197_vm1, %v1448_v55 }
 0x5b6   :  { %v2604_v62 = vpop.f32.mrb[132].mxu1 }
 0x5b7   :  { %v1369_v15 = vadd.f32 %v2604_v62, %v3412_v58  ;;  %v1360_v12 = vpop.f32.mrb[133].mxu1 }
 0x5b8   :  { %v1361_v14 = vadd.f32 %v3412_v58, %v1360_v12  ;;  %v2605_v3 = vpop.f32.mrb[134].mxu1 }
 0x5b9   :  { %v1372_v29 = vadd.f32 %v2605_v3, %v3412_v58  ;;  %v1363_v63 = vpop.f32.mrb[135].mxu1  ;;  %v1429_v51 = vmax.f32 %v1369_v15, 0.0 }
 0x5ba   :  { %v1364_v31 = vadd.f32 %v3412_v58, %v1363_v63  ;;  %v1427_v56 = vmax.f32 %v1361_v14, 0.0 }
 0x5bb   :  { %v1430_v27 = vmax.f32 %v1372_v29, 0.0 }
 0x5bc   :  { %v1428_v21 = vmax.f32 %v1364_v31, 0.0 }
 0x5bd   :  { %v1450_v53 = vpack.c.bf16 %v1430_v27, %v1429_v51 }
 0x5be   :  { %v1449_v5 = vpack.c.bf16 %v1428_v21, %v1427_v56 }
 0x5c0   :  { %2638 = vmatprep.mubr.msk.bf16.mxu0 %vm1197_vm1, %v1449_v5 }
 0x5c1   :  { %2639 = vmatmul.mubr.msk.bf16.gmra.mrb[132].mxu0 %vm1197_vm1, %v1450_v53 }
 0x5c6   :  { %v2608_v60 = vpop.f32.mrb[136].mxu1 }
 0x5c7   :  { %v1385_v48 = vadd.f32 %v2608_v60, %v3412_v58  ;;  %v1376_v25 = vpop.f32.mrb[137].mxu1 }
 0x5c8   :  { %v1377_v16 = vadd.f32 %v3412_v58, %v1376_v25  ;;  %v2609_v17 = vpop.f32.mrb[138].mxu1 }
 0x5c9   :  { %v1388_v20 = vadd.f32 %v2609_v17, %v3412_v58  ;;  %v1379_v22 = vpop.f32.mrb[139].mxu1  ;;  %v1433_v26 = vmax.f32 %v1385_v48, 0.0 }
 0x5ca   :  { %v1380_v24 = vadd.f32 %v3412_v58, %v1379_v22  ;;  %v1431_v28 = vmax.f32 %v1377_v16, 0.0 }
 0x5cb   :  { %v1434_v18 = vmax.f32 %v1388_v20, 0.0 }
 0x5cc   :  { %v1432_v30 = vmax.f32 %v1380_v24, 0.0 }
 0x5cd   :  { %v1452_v32 = vpack.c.bf16 %v1434_v18, %v1433_v26 }
 0x5ce   :  { %v1451_v33 = vpack.c.bf16 %v1432_v30, %v1431_v28 }
 0x5d0   :  { %2642 = vmatprep.mubr.msk.bf16.mxu0 %vm1197_vm1, %v1451_v33 }
 0x5d1   :  { %2643 = vmatmul.mubr.msk.bf16.gmra.mrb[136].mxu0 %vm1197_vm1, %v1452_v32 }
 0x5d6   :  { %v2612_v34 = vpop.f32.mrb[140].mxu1 }
 0x5d7   :  { %v1401_v35 = vadd.f32 %v2612_v34, %v3412_v58  ;;  %v1392_v36 = vpop.f32.mrb[141].mxu1 }
 0x5d8   :  { %v1393_v37 = vadd.f32 %v3412_v58, %v1392_v36  ;;  %v2613_v38 = vpop.f32.mrb[142].mxu1 }
 0x5d9   :  { %v1404_v39 = vadd.f32 %v2613_v38, %v3412_v58  ;;  %v1395_v40 = vpop.f32.mrb[143].mxu1  ;;  %v1437_v42 = vmax.f32 %v1401_v35, 0.0 }
 0x5da   :  { %v1396_v41 = vadd.f32 %v3412_v58, %v1395_v40  ;;  %v1435_v44 = vmax.f32 %v1393_v37, 0.0 }
 0x5db   :  { %v1438_v43 = vmax.f32 %v1404_v39, 0.0 }
 0x5dc   :  { %v1436_v45 = vmax.f32 %v1396_v41, 0.0 }
 0x5dd   :  { %v1454_v46 = vpack.c.bf16 %v1438_v43, %v1437_v42 }
 0x5de   :  { %v1453_v47 = vpack.c.bf16 %v1436_v45, %v1435_v44 }
 0x5e0   :  { %2646 = vmatprep.mubr.msk.bf16.mxu0 %vm1197_vm1, %v1453_v47 }
 0x5e1   :  { %2647 = vmatmul.mubr.msk.bf16.gmra.mrb[140].mxu0 %vm1197_vm1, %v1454_v46 }
 0x644   :  { %v2620_v59 = vpop.f32.mrb[112].mxu0 }
 0x645   :  { %v3468_v4 = vadd.f32 %v2620_v59, %v3465_v54  ;;  %v1555_v58 = vpop.f32.mrb[113].mxu0 }
 0x646   :  { %v3471_v9 = vadd.f32 %v3465_v54, %v1555_v58  ;;  %v2621_v10 = vpop.f32.mrb[114].mxu0 }
 0x647   :  { %1686 = vmax.xlane.f32.xlu1 %v3468_v4  ;;  %v1558_v11 = vpop.f32.mrb[115].mxu0  ;;  %v3476_v49 = vadd.f32 %v2621_v10, %v3465_v54 }
 0x648   :  { %1682 = vmax.xlane.f32.xlu0 %v3471_v9  ;;  %v3479_v23 = vadd.f32 %v3465_v54, %v1558_v11 }
 0x64b   :  { %1688 = vmax.xlane.f32.xlu1 %v3476_v49 }
 0x64c   :  { %1684 = vmax.xlane.f32.xlu0 %v3479_v23 }
 0x654   :  { %v2624_v0 = vpop.f32.mrb[116].mxu0 }
 0x655   :  { %v3484_v57 = vadd.f32 %v2624_v0, %v3465_v54  ;;  %v1571_v8 = vpop.f32.mrb[117].mxu0 }
 0x656   :  { %v2625_v6 = vpop.f32.mrb[118].mxu0  ;;  %v3491_v1 = vadd.f32 %v3465_v54, %v1571_v8 }
 0x657   :  { %v3487_v19 = vadd.f32 %v2625_v6, %v3465_v54  ;;  %1694 = vmax.xlane.f32.xlu0 %v3484_v57  ;;  %v1574_v52 = vpop.f32.mrb[119].mxu0 }
 0x658   :  { %v3495_v61 = vadd.f32 %v3465_v54, %v1574_v52 }
 0x659   :  { %1696 = vmax.xlane.f32.xlu1 %v3487_v19 }
 0x65b   :  { %1690 = vmax.xlane.f32.xlu0 %v3491_v1 }
 0x65d   :  { %1692 = vmax.xlane.f32.xlu1 %v3495_v61 }
 0x664   :  { %v2628_v13 = vpop.f32.mrb[120].mxu0 }
 0x665   :  { %v3500_v50 = vadd.f32 %v2628_v13, %v3465_v54  ;;  %v1587_v2 = vpop.f32.mrb[121].mxu0 }
 0x666   :  { %v2629_v55 = vpop.f32.mrb[122].mxu0  ;;  %v3507_v15 = vadd.f32 %v3465_v54, %v1587_v2 }
 0x667   :  { %v3503_v7 = vadd.f32 %v2629_v55, %v3465_v54  ;;  %1702 = vmax.xlane.f32.xlu0 %v3500_v50  ;;  %v1590_v62 = vpop.f32.mrb[123].mxu0 }
 0x668   :  { %v3511_v12 = vadd.f32 %v3465_v54, %v1590_v62 }
 0x669   :  { %1704 = vmax.xlane.f32.xlu1 %v3503_v7 }
 0x66b   :  { %1698 = vmax.xlane.f32.xlu0 %v3507_v15 }
 0x66d   :  { %1700 = vmax.xlane.f32.xlu1 %v3511_v12 }
 0x674   :  { %v2632_v14 = vpop.f32.mrb[124].mxu0 }
 0x675   :  { %v3516_v3 = vadd.f32 %v2632_v14, %v3465_v54  ;;  %v1603_v29 = vpop.f32.mrb[125].mxu0 }
 0x676   :  { %v2633_v63 = vpop.f32.mrb[126].mxu0  ;;  %v3523_v27 = vadd.f32 %v3465_v54, %v1603_v29 }
 0x677   :  { %v3519_v31 = vadd.f32 %v2633_v63, %v3465_v54  ;;  %1710 = vmax.xlane.f32.xlu0 %v3516_v3  ;;  %v1606_v51 = vpop.f32.mrb[127].mxu0 }
 0x678   :  { %v3527_v56 = vadd.f32 %v3465_v54, %v1606_v51 }
 0x679   :  { %1712 = vmax.xlane.f32.xlu1 %v3519_v31 }
 0x67b   :  { %1706 = vmax.xlane.f32.xlu0 %v3523_v27 }
 0x67d   :  { %1708 = vmax.xlane.f32.xlu1 %v3527_v56 }
 0x684   :  { %v2636_v21 = vpop.f32.mrb[128].mxu0 }
 0x685   :  { %v3532_v53 = vadd.f32 %v2636_v21, %v3465_v54  ;;  %v1619_v5 = vpop.f32.mrb[129].mxu0 }
 0x686   :  { %v2637_v60 = vpop.f32.mrb[130].mxu0  ;;  %v3539_v16 = vadd.f32 %v3465_v54, %v1619_v5 }
 0x687   :  { %v3535_v48 = vadd.f32 %v2637_v60, %v3465_v54  ;;  %1718 = vmax.xlane.f32.xlu0 %v3532_v53  ;;  %v1622_v25 = vpop.f32.mrb[131].mxu0 }
 0x688   :  { %v3543_v17 = vadd.f32 %v3465_v54, %v1622_v25 }
 0x689   :  { %1720 = vmax.xlane.f32.xlu1 %v3535_v48 }
 0x68b   :  { %1714 = vmax.xlane.f32.xlu0 %v3539_v16 }
 0x68d   :  { %1716 = vmax.xlane.f32.xlu1 %v3543_v17 }
 0x694   :  { %v2640_v20 = vpop.f32.mrb[132].mxu0 }
 0x695   :  { %v3548_v22 = vadd.f32 %v2640_v20, %v3465_v54  ;;  %v1635_v24 = vpop.f32.mrb[133].mxu0 }
 0x696   :  { %v2641_v26 = vpop.f32.mrb[134].mxu0  ;;  %v3555_v30 = vadd.f32 %v3465_v54, %v1635_v24 }
 0x697   :  { %v3551_v18 = vadd.f32 %v2641_v26, %v3465_v54  ;;  %1726 = vmax.xlane.f32.xlu0 %v3548_v22  ;;  %v1638_v28 = vpop.f32.mrb[135].mxu0 }
 0x698   :  { %v3559_v32 = vadd.f32 %v3465_v54, %v1638_v28 }
 0x699   :  { %1728 = vmax.xlane.f32.xlu1 %v3551_v18 }
 0x69b   :  { %1722 = vmax.xlane.f32.xlu0 %v3555_v30 }
 0x69d   :  { %1724 = vmax.xlane.f32.xlu1 %v3559_v32 }
 0x6a4   :  { %v2644_v33 = vpop.f32.mrb[136].mxu0 }
 0x6a5   :  { %v3564_v34 = vadd.f32 %v2644_v33, %v3465_v54  ;;  %v1651_v35 = vpop.f32.mrb[137].mxu0 }
 0x6a6   :  { %v2645_v36 = vpop.f32.mrb[138].mxu0  ;;  %v3571_v39 = vadd.f32 %v3465_v54, %v1651_v35 }
 0x6a7   :  { %v3567_v37 = vadd.f32 %v2645_v36, %v3465_v54  ;;  %1734 = vmax.xlane.f32.xlu0 %v3564_v34  ;;  %v1654_v38 = vpop.f32.mrb[139].mxu0 }
 0x6a8   :  { %v3575_v40 = vadd.f32 %v3465_v54, %v1654_v38 }
 0x6a9   :  { %1736 = vmax.xlane.f32.xlu1 %v3567_v37 }
 0x6ab   :  { %1730 = vmax.xlane.f32.xlu0 %v3571_v39 }
 0x6ad   :  { %1732 = vmax.xlane.f32.xlu1 %v3575_v40 }
 0x6b4   :  { %v2648_v41 = vpop.f32.mrb[140].mxu0 }
 0x6b5   :  { %v1667_v42 = vpop.f32.mrb[141].mxu0  ;;  %v3587_v47 = vadd.f32 %v2648_v41, %v3465_v54 }
 0x6b6   :  { %v3580_v43 = vadd.f32 %v3465_v54, %v1667_v42  ;;  %v2649_v44 = vpop.f32.mrb[142].mxu0 }
 0x6b7   :  { %v1670_v45 = vpop.f32.mrb[143].mxu0  ;;  %v3591_v59 = vadd.f32 %v2649_v44, %v3465_v54 }
 0x6b8   :  { %v3583_v46 = vadd.f32 %v3465_v54, %v1670_v45  ;;  %1738 = vmax.xlane.f32.xlu0 %v3580_v43 }
 0x6ba   :  { %1740 = vmax.xlane.f32.xlu1 %v3583_v46 }
 0x6bc   :  { %1742 = vmax.xlane.f32.xlu0 %v3587_v47 }
 0x6be   :  { %1744 = vmax.xlane.f32.xlu1 %v3591_v59 }
 0x6d4   :  { %v1687_v58 = vpop.xlane.xlu1 %1686 }
 0x6d5   :  { %v3596_v10 = vsub.f32 %v3468_v4, %v1687_v58  ;;  %v1683_v11 = vpop.xlane.xlu0 %1682 }
 0x6d6   :  { %v3599_v0 = vsub.f32 %v3471_v9, %v1683_v11 }
 0x6d7   :  { %v1782_v8 = vmul.f32 1.442695, %v3596_v10 }
 0x6d8   :  { %v1778_v6 = vmul.f32 1.442695, %v3599_v0  ;;  %v1689_v52 = vpop.xlane.xlu1 %1688 }
 0x6d9   :  { %2739 = vpow2.f32 %v1782_v8  ;;  %v3604_v54 = vsub.f32 %v3476_v49, %v1689_v52  ;;  %v1685_v13 = vpop.xlane.xlu0 %1684 }
 0x6da   :  { %v3607_v2 = vsub.f32 %v3479_v23, %v1685_v13  ;;  %2741 = vpow2.f32 %v1778_v6 }
 0x6db   :  { %v1784_v4 = vmul.f32 1.442695, %v3604_v54 }
 0x6dc   :  { %v1780_v9 = vmul.f32 1.442695, %v3607_v2 }
 0x6dd   :  { %2743 = vpow2.f32 %v1784_v4 }
 0x6de   :  { %2745 = vpow2.f32 %v1780_v9 }
 0x6e3   :  { %v2740_v55 = vpop.eup %2739 }
 0x6e4   :  { %1846 = vadd.xlane.f32.xlu0 %v2740_v55  ;;  %v1695_v62 = vpop.xlane.xlu0 %1694  ;;  %v2742_v29 = vpop.eup %2741 }
 0x6e5   :  { %v3612_v14 = vsub.f32 %v3484_v57, %v1695_v62 }
 0x6e6   :  { %v1697_v49 = vpop.xlane.xlu1 %1696 }
 0x6e7   :  { %v2744_v63 = vpop.eup %2743  ;;  %v1790_v51 = vmul.f32 1.442695, %v3612_v14  ;;  %v3616_v23 = vsub.f32 %v3487_v19, %v1697_v49 }
 0x6e8   :  { %1848 = vadd.xlane.f32.xlu1 %v2744_v63  ;;  %1842 = vadd.xlane.f32.xlu0 %v2742_v29  ;;  %v1691_v21 = vpop.xlane.xlu0 %1690  ;;  %v2746_v57 = vpop.eup %2745 }
 0x6e9   :  { %2747 = vpow2.f32 %v1790_v51  ;;  %v1792_v5 = vmul.f32 1.442695, %v3616_v23  ;;  %v3620_v60 = vsub.f32 %v3491_v1, %v1691_v21 }
 0x6ea   :  { %v1693_v25 = vpop.xlane.xlu1 %1692 }
 0x6eb   :  { %2749 = vpow2.f32 %v1792_v5  ;;  %v1786_v20 = vmul.f32 1.442695, %v3620_v60  ;;  %v3624_v24 = vsub.f32 %v3495_v61, %v1693_v25 }
 0x6ec   :  { %1844 = vadd.xlane.f32.xlu1 %v2746_v57 }
 0x6ed   :  { %2751 = vpow2.f32 %v1786_v20  ;;  %v1788_v19 = vmul.f32 1.442695, %v3624_v24 }
 0x6ef   :  { %2753 = vpow2.f32 %v1788_v19 }
 0x6f3   :  { %v2748_v26 = vpop.eup %2747 }
 0x6f4   :  { %1854 = vadd.xlane.f32.xlu0 %v2748_v26  ;;  %v1703_v28 = vpop.xlane.xlu0 %1702 }
 0x6f5   :  { %v2750_v33 = vpop.eup %2749  ;;  %v3628_v1 = vsub.f32 %v3500_v50, %v1703_v28 }
 0x6f6   :  { %v1705_v35 = vpop.xlane.xlu1 %1704  ;;  %1856 = vadd.xlane.f32.xlu1 %v2750_v33 }
 0x6f7   :  { %v2752_v36 = vpop.eup %2751  ;;  %v1798_v38 = vmul.f32 1.442695, %v3628_v1  ;;  %v3632_v61 = vsub.f32 %v3503_v7, %v1705_v35 }
 0x6f8   :  { %1850 = vadd.xlane.f32.xlu0 %v2752_v36  ;;  %v1699_v41 = vpop.xlane.xlu0 %1698 }
 0x6f9   :  { %v2754_v42 = vpop.eup %2753  ;;  %2755 = vpow2.f32 %v1798_v38  ;;  %v1800_v44 = vmul.f32 1.442695, %v3632_v61  ;;  %v3636_v45 = vsub.f32 %v3507_v15, %v1699_v41 }
 0x6fa   :  { %v1701_v58 = vpop.xlane.xlu1 %1700  ;;  %1852 = vadd.xlane.f32.xlu1 %v2754_v42 }
 0x6fb   :  { %2757 = vpow2.f32 %v1800_v44  ;;  %v1794_v50 = vmul.f32 1.442695, %v3636_v45  ;;  %v3640_v11 = vsub.f32 %v3511_v12, %v1701_v58 }
 0x6fd   :  { %2759 = vpow2.f32 %v1794_v50  ;;  %v1796_v7 = vmul.f32 1.442695, %v3640_v11 }
 0x6ff   :  { %2761 = vpow2.f32 %v1796_v7 }
 0x703   :  { %v2756_v8 = vpop.eup %2755 }
 0x704   :  { %1862 = vadd.xlane.f32.xlu0 %v2756_v8  ;;  %v1711_v6 = vpop.xlane.xlu0 %1710 }
 0x705   :  { %v2758_v52 = vpop.eup %2757  ;;  %v3644_v13 = vsub.f32 %v3516_v3, %v1711_v6 }
 0x706   :  { %v1713_v15 = vpop.xlane.xlu1 %1712  ;;  %1864 = vadd.xlane.f32.xlu1 %v2758_v52 }
 0x707   :  { %v2760_v4 = vpop.eup %2759  ;;  %v1806_v9 = vmul.f32 1.442695, %v3644_v13  ;;  %v3648_v55 = vsub.f32 %v3519_v31, %v1713_v15 }
 0x708   :  { %1858 = vadd.xlane.f32.xlu0 %v2760_v4  ;;  %v1707_v12 = vpop.xlane.xlu0 %1706 }
 0x709   :  { %v2762_v62 = vpop.eup %2761  ;;  %2763 = vpow2.f32 %v1806_v9  ;;  %v1808_v29 = vmul.f32 1.442695, %v3648_v55  ;;  %v3652_v49 = vsub.f32 %v3523_v27, %v1707_v12 }
 0x70a   :  { %v1709_v63 = vpop.xlane.xlu1 %1708  ;;  %1860 = vadd.xlane.f32.xlu1 %v2762_v62 }
 0x70b   :  { %2765 = vpow2.f32 %v1808_v29  ;;  %v1802_v3 = vmul.f32 1.442695, %v3652_v49  ;;  %v3656_v51 = vsub.f32 %v3527_v56, %v1709_v63 }
 0x70d   :  { %2767 = vpow2.f32 %v1802_v3  ;;  %v1804_v31 = vmul.f32 1.442695, %v3656_v51 }
 0x70f   :  { %2769 = vpow2.f32 %v1804_v31 }
 0x713   :  { %v2764_v21 = vpop.eup %2763 }
 0x714   :  { %1870 = vadd.xlane.f32.xlu0 %v2764_v21  ;;  %v1719_v5 = vpop.xlane.xlu0 %1718 }
 0x715   :  { %v2766_v25 = vpop.eup %2765  ;;  %v3660_v57 = vsub.f32 %v3532_v53, %v1719_v5 }
 0x716   :  { %v1721_v27 = vpop.xlane.xlu1 %1720  ;;  %1872 = vadd.xlane.f32.xlu1 %v2766_v25 }
 0x717   :  { %v2768_v20 = vpop.eup %2767  ;;  %v1814_v19 = vmul.f32 1.442695, %v3660_v57  ;;  %v3664_v26 = vsub.f32 %v3535_v48, %v1721_v27 }
 0x718   :  { %1866 = vadd.xlane.f32.xlu0 %v2768_v20  ;;  %v1715_v56 = vpop.xlane.xlu0 %1714 }
 0x719   :  { %v2770_v28 = vpop.eup %2769  ;;  %2771 = vpow2.f32 %v1814_v19  ;;  %v1816_v33 = vmul.f32 1.442695, %v3664_v26  ;;  %v3668_v35 = vsub.f32 %v3539_v16, %v1715_v56 }
 0x71a   :  { %v1717_v36 = vpop.xlane.xlu1 %1716  ;;  %1868 = vadd.xlane.f32.xlu1 %v2770_v28 }
 0x71b   :  { %2773 = vpow2.f32 %v1816_v33  ;;  %v1810_v53 = vmul.f32 1.442695, %v3668_v35  ;;  %v3672_v38 = vsub.f32 %v3543_v17, %v1717_v36 }
 0x71d   :  { %2775 = vpow2.f32 %v1810_v53  ;;  %v1812_v48 = vmul.f32 1.442695, %v3672_v38 }
 0x71f   :  { %2777 = vpow2.f32 %v1812_v48 }
 0x723   :  { %v2772_v41 = vpop.eup %2771 }
 0x724   :  { %1878 = vadd.xlane.f32.xlu0 %v2772_v41  ;;  %v1727_v42 = vpop.xlane.xlu0 %1726 }
 0x725   :  { %v2774_v44 = vpop.eup %2773  ;;  %v3676_v58 = vsub.f32 %v3548_v22, %v1727_v42 }
 0x726   :  { %v1729_v16 = vpop.xlane.xlu1 %1728  ;;  %1880 = vadd.xlane.f32.xlu1 %v2774_v44 }
 0x727   :  { %v2776_v50 = vpop.eup %2775  ;;  %v1822_v7 = vmul.f32 1.442695, %v3676_v58  ;;  %v3680_v8 = vsub.f32 %v3551_v18, %v1729_v16 }
 0x728   :  { %1874 = vadd.xlane.f32.xlu0 %v2776_v50  ;;  %v1723_v17 = vpop.xlane.xlu0 %1722 }
 0x729   :  { %v2778_v6 = vpop.eup %2777  ;;  %2779 = vpow2.f32 %v1822_v7  ;;  %v1824_v52 = vmul.f32 1.442695, %v3680_v8  ;;  %v3684_v15 = vsub.f32 %v3555_v30, %v1723_v17 }
 0x72a   :  { %v1725_v4 = vpop.xlane.xlu1 %1724  ;;  %1876 = vadd.xlane.f32.xlu1 %v2778_v6 }
 0x72b   :  { %2781 = vpow2.f32 %v1824_v52  ;;  %v1818_v22 = vmul.f32 1.442695, %v3684_v15  ;;  %v3688_v9 = vsub.f32 %v3559_v32, %v1725_v4 }
 0x72d   :  { %2783 = vpow2.f32 %v1818_v22  ;;  %v1820_v18 = vmul.f32 1.442695, %v3688_v9 }
 0x72f   :  { %2785 = vpow2.f32 %v1820_v18 }
 0x733   :  { %v2780_v12 = vpop.eup %2779 }
 0x734   :  { %1886 = vadd.xlane.f32.xlu0 %v2780_v12  ;;  %v1735_v62 = vpop.xlane.xlu0 %1734 }
 0x735   :  { %v2782_v29 = vpop.eup %2781  ;;  %v3692_v63 = vsub.f32 %v3564_v34, %v1735_v62 }
 0x736   :  { %v1737_v30 = vpop.xlane.xlu1 %1736  ;;  %1888 = vadd.xlane.f32.xlu1 %v2782_v29 }
 0x737   :  { %v2784_v3 = vpop.eup %2783  ;;  %v1830_v31 = vmul.f32 1.442695, %v3692_v63  ;;  %v3696_v21 = vsub.f32 %v3567_v37, %v1737_v30 }
 0x738   :  { %1882 = vadd.xlane.f32.xlu0 %v2784_v3  ;;  %v1731_v32 = vpop.xlane.xlu0 %1730 }
 0x739   :  { %v2786_v5 = vpop.eup %2785  ;;  %2787 = vpow2.f32 %v1830_v31  ;;  %v1832_v25 = vmul.f32 1.442695, %v3696_v21  ;;  %v3700_v27 = vsub.f32 %v3571_v39, %v1731_v32 }
 0x73a   :  { %v1733_v20 = vpop.xlane.xlu1 %1732  ;;  %1884 = vadd.xlane.f32.xlu1 %v2786_v5 }
 0x73b   :  { %2789 = vpow2.f32 %v1832_v25  ;;  %v1826_v34 = vmul.f32 1.442695, %v3700_v27  ;;  %v3704_v19 = vsub.f32 %v3575_v40, %v1733_v20 }
 0x73d   :  { %2791 = vpow2.f32 %v1826_v34  ;;  %v1828_v37 = vmul.f32 1.442695, %v3704_v19 }
 0x73f   :  { %2793 = vpow2.f32 %v1828_v37 }
 0x743   :  { %v2788_v56 = vpop.eup %2787 }
 0x744   :  { %1894 = vadd.xlane.f32.xlu0 %v2788_v56 }
 0x745   :  { %v2790_v28 = vpop.eup %2789  ;;  %v1739_v33 = vpop.xlane.xlu0 %1738 }
 0x746   :  { %v3708_v36 = vsub.f32 %v3580_v43, %v1739_v33  ;;  %1896 = vadd.xlane.f32.xlu1 %v2790_v28 }
 0x747   :  { %v2792_v39 = vpop.eup %2791  ;;  %v1741_v53 = vpop.xlane.xlu1 %1740 }
 0x748   :  { %v1834_v48 = vmul.f32 1.442695, %v3708_v36  ;;  %v3712_v41 = vsub.f32 %v3583_v46, %v1741_v53  ;;  %1890 = vadd.xlane.f32.xlu0 %v2792_v39 }
 0x749   :  { %v2794_v40 = vpop.eup %2793  ;;  %v1743_v42 = vpop.xlane.xlu0 %1742 }
 0x74a   :  { %2795 = vpow2.f32 %v1834_v48  ;;  %v1836_v44 = vmul.f32 1.442695, %v3712_v41  ;;  %v3716_v16 = vsub.f32 %v3587_v47, %v1743_v42  ;;  %1892 = vadd.xlane.f32.xlu1 %v2794_v40 }
 0x74b   :  { %v1745_v43 = vpop.xlane.xlu1 %1744 }
 0x74c   :  { %2797 = vpow2.f32 %v1836_v44  ;;  %v1838_v50 = vmul.f32 1.442695, %v3716_v16  ;;  %v3720_v7 = vsub.f32 %v3591_v59, %v1745_v43 }
 0x74e   :  { %2799 = vpow2.f32 %v1838_v50  ;;  %v1840_v46 = vmul.f32 1.442695, %v3720_v7 }
 0x750   :  { %2801 = vpow2.f32 %v1840_v46 }
 0x754   :  { %v2796_v17 = vpop.eup %2795 }
 0x755   :  { %1898 = vadd.xlane.f32.xlu0 %v2796_v17 }
 0x756   :  { %v2798_v6 = vpop.eup %2797 }
 0x757   :  { %1900 = vadd.xlane.f32.xlu1 %v2798_v6 }
 0x758   :  { %v2800_v52 = vpop.eup %2799 }
 0x759   :  { %1902 = vadd.xlane.f32.xlu0 %v2800_v52 }
 0x75a   :  { %v2802_v47 = vpop.eup %2801 }
 0x75b   :  { %1904 = vadd.xlane.f32.xlu1 %v2802_v47 }
 0x771   :  { %v1847_v4 = vpop.xlane.xlu0 %1846 }
 0x772   :  { %2803 = vlog2.f32 %v1847_v4 }
 0x775   :  { %v1849_v22 = vpop.xlane.xlu1 %1848  ;;  %v1843_v18 = vpop.xlane.xlu0 %1842 }
 0x776   :  { %2805 = vlog2.f32 %v1849_v22 }
 0x777   :  { %2807 = vlog2.f32 %v1843_v18 }
 0x779   :  { %v1845_v59 = vpop.xlane.xlu1 %1844 }
 0x77a   :  { %2809 = vlog2.f32 %v1845_v59 }
 0x77c   :  { %v2804_v12 = vpop.eup %2803 }
 0x77d   :  { %v1911_v62 = vmul.f32 0.6931472, %v2804_v12 }
 0x77f   :  { %v1972_v29 = vsub.f32 %v3596_v10, %v1911_v62 }
 0x780   :  { %v2806_v30 = vpop.eup %2805 }
 0x781   :  { %v2808_v3 = vpop.eup %2807  ;;  %2004 = vst [vmem:[#allocation5 + $0x10] sm:$0xff] %v1972_v29  ;;  %v1913_v31 = vmul.f32 0.6931472, %v2806_v30  ;;  %v1855_v32 = vpop.xlane.xlu0 %1854 }
 0x782   :  { %v1907_v5 = vmul.f32 0.6931472, %v2808_v3  ;;  %2811 = vlog2.f32 %v1855_v32 }
 0x783   :  { %v1973_v25 = vsub.f32 %v3604_v54, %v1913_v31  ;;  %v1857_v20 = vpop.xlane.xlu1 %1856 }
 0x784   :  { %v2810_v34 = vpop.eup %2809  ;;  %v1970_v37 = vsub.f32 %v3599_v0, %v1907_v5  ;;  %2813 = vlog2.f32 %v1857_v20 }
 0x785   :  { %2005 = vst [vmem:[#allocation5 + $0x18] sm:$0xff] %v1973_v25  ;;  %v1909_v56 = vmul.f32 0.6931472, %v2810_v34  ;;  %v1851_v28 = vpop.xlane.xlu0 %1850 }
 0x786   :  { %2002 = vst [vmem:[#allocation5] sm:$0xff] %v1970_v37  ;;  %2815 = vlog2.f32 %v1851_v28 }
 0x787   :  { %v1971_v10 = vsub.f32 %v3607_v2, %v1909_v56  ;;  %v1853_v33 = vpop.xlane.xlu1 %1852 }
 0x788   :  { %2817 = vlog2.f32 %v1853_v33 }
 0x789   :  { %2003 = vst [vmem:[#allocation5 + $0x8] sm:$0xff] %v1971_v10 }
 0x78c   :  { %v2812_v39 = vpop.eup %2811 }
 0x78d   :  { %v1919_v53 = vmul.f32 0.6931472, %v2812_v39 }
 0x78e   :  { %v2814_v48 = vpop.eup %2813 }
 0x78f   :  { %v1976_v54 = vsub.f32 %v3612_v14, %v1919_v53  ;;  %v1921_v40 = vmul.f32 0.6931472, %v2814_v48 }
 0x790   :  { %v2816_v42 = vpop.eup %2815 }
 0x791   :  { %2008 = vst [vmem:[#allocation5 + $0x30] sm:$0xff] %v1976_v54  ;;  %v1977_v0 = vsub.f32 %v3616_v23, %v1921_v40  ;;  %v1915_v44 = vmul.f32 0.6931472, %v2816_v42  ;;  %v1863_v43 = vpop.xlane.xlu0 %1862 }
 0x792   :  { %v2818_v50 = vpop.eup %2817  ;;  %2819 = vlog2.f32 %v1863_v43 }
 0x793   :  { %2009 = vst [vmem:[#allocation5 + $0x38] sm:$0xff] %v1977_v0  ;;  %v1974_v2 = vsub.f32 %v3620_v60, %v1915_v44  ;;  %v1917_v46 = vmul.f32 0.6931472, %v2818_v50  ;;  %v1865_v17 = vpop.xlane.xlu1 %1864 }
 0x794   :  { %2821 = vlog2.f32 %v1865_v17 }
 0x795   :  { %2006 = vst [vmem:[#allocation5 + $0x20] sm:$0xff] %v1974_v2  ;;  %v1975_v6 = vsub.f32 %v3624_v24, %v1917_v46  ;;  %v1859_v52 = vpop.xlane.xlu0 %1858 }
 0x796   :  { %2823 = vlog2.f32 %v1859_v52 }
 0x797   :  { %2007 = vst [vmem:[#allocation5 + $0x28] sm:$0xff] %v1975_v6  ;;  %v1861_v14 = vpop.xlane.xlu1 %1860 }
 0x798   :  { %2825 = vlog2.f32 %v1861_v14 }
 0x79c   :  { %v2820_v47 = vpop.eup %2819 }
 0x79d   :  { %v1927_v23 = vmul.f32 0.6931472, %v2820_v47 }
 0x79e   :  { %v2822_v4 = vpop.eup %2821 }
 0x79f   :  { %v1980_v22 = vsub.f32 %v3628_v1, %v1927_v23  ;;  %v1929_v18 = vmul.f32 0.6931472, %v2822_v4 }
 0x7a0   :  { %v2824_v59 = vpop.eup %2823 }
 0x7a1   :  { %2012 = vst [vmem:[#allocation5 + $0x50] sm:$0xff] %v1980_v22  ;;  %v1981_v60 = vsub.f32 %v3632_v61, %v1929_v18  ;;  %v1923_v12 = vmul.f32 0.6931472, %v2824_v59  ;;  %v1871_v62 = vpop.xlane.xlu0 %1870 }
 0x7a2   :  { %v2826_v29 = vpop.eup %2825  ;;  %2827 = vlog2.f32 %v1871_v62 }
 0x7a3   :  { %2013 = vst [vmem:[#allocation5 + $0x58] sm:$0xff] %v1981_v60  ;;  %v1978_v24 = vsub.f32 %v3636_v45, %v1923_v12  ;;  %v1925_v30 = vmul.f32 0.6931472, %v2826_v29  ;;  %v1873_v3 = vpop.xlane.xlu1 %1872 }
 0x7a4   :  { %2829 = vlog2.f32 %v1873_v3 }
 0x7a5   :  { %2010 = vst [vmem:[#allocation5 + $0x40] sm:$0xff] %v1978_v24  ;;  %v1979_v31 = vsub.f32 %v3640_v11, %v1925_v30  ;;  %v1867_v32 = vpop.xlane.xlu0 %1866 }
 0x7a6   :  { %2831 = vlog2.f32 %v1867_v32 }
 0x7a7   :  { %2011 = vst [vmem:[#allocation5 + $0x48] sm:$0xff] %v1979_v31  ;;  %v1869_v1 = vpop.xlane.xlu1 %1868 }
 0x7a8   :  { %2833 = vlog2.f32 %v1869_v1 }
 0x7ac   :  { %v2828_v5 = vpop.eup %2827 }
 0x7ad   :  { %v1935_v61 = vmul.f32 0.6931472, %v2828_v5 }
 0x7ae   :  { %v2830_v25 = vpop.eup %2829 }
 0x7af   :  { %v1984_v20 = vsub.f32 %v3644_v13, %v1935_v61  ;;  %v1937_v34 = vmul.f32 0.6931472, %v2830_v25 }
 0x7b0   :  { %v2832_v37 = vpop.eup %2831 }
 0x7b1   :  { %2016 = vst [vmem:[#allocation5 + $0x70] sm:$0xff] %v1984_v20  ;;  %v1985_v45 = vsub.f32 %v3648_v55, %v1937_v34  ;;  %v1931_v56 = vmul.f32 0.6931472, %v2832_v37  ;;  %v1879_v28 = vpop.xlane.xlu0 %1878 }
 0x7b2   :  { %v2834_v10 = vpop.eup %2833  ;;  %2835 = vlog2.f32 %v1879_v28 }
 0x7b3   :  { %2017 = vst [vmem:[#allocation5 + $0x78] sm:$0xff] %v1985_v45  ;;  %v1982_v11 = vsub.f32 %v3652_v49, %v1931_v56  ;;  %v1933_v33 = vmul.f32 0.6931472, %v2834_v10  ;;  %v1881_v39 = vpop.xlane.xlu1 %1880 }
 0x7b4   :  { %2837 = vlog2.f32 %v1881_v39 }
 0x7b5   :  { %2014 = vst [vmem:[#allocation5 + $0x60] sm:$0xff] %v1982_v11  ;;  %v1983_v53 = vsub.f32 %v3656_v51, %v1933_v33  ;;  %v1875_v48 = vpop.xlane.xlu0 %1874 }
 0x7b6   :  { %2839 = vlog2.f32 %v1875_v48 }
 0x7b7   :  { %2015 = vst [vmem:[#allocation5 + $0x68] sm:$0xff] %v1983_v53  ;;  %v1877_v13 = vpop.xlane.xlu1 %1876 }
 0x7b8   :  { %2841 = vlog2.f32 %v1877_v13 }
 0x7bc   :  { %v2836_v54 = vpop.eup %2835 }
 0x7bd   :  { %v1943_v55 = vmul.f32 0.6931472, %v2836_v54 }
 0x7be   :  { %v2838_v40 = vpop.eup %2837 }
 0x7bf   :  { %v1988_v42 = vsub.f32 %v3660_v57, %v1943_v55  ;;  %v1945_v0 = vmul.f32 0.6931472, %v2838_v40 }
 0x7c0   :  { %v2840_v44 = vpop.eup %2839 }
 0x7c1   :  { %2020 = vst [vmem:[#allocation5 + $0x90] sm:$0xff] %v1988_v42  ;;  %v1989_v49 = vsub.f32 %v3664_v26, %v1945_v0  ;;  %v1939_v43 = vmul.f32 0.6931472, %v2840_v44  ;;  %v1887_v50 = vpop.xlane.xlu0 %1886 }
 0x7c2   :  { %v2842_v2 = vpop.eup %2841  ;;  %2843 = vlog2.f32 %v1887_v50 }
 0x7c3   :  { %2021 = vst [vmem:[#allocation5 + $0x98] sm:$0xff] %v1989_v49  ;;  %v1986_v51 = vsub.f32 %v3668_v35, %v1939_v43  ;;  %v1941_v46 = vmul.f32 0.6931472, %v2842_v2  ;;  %v1889_v17 = vpop.xlane.xlu1 %1888 }
 0x7c4   :  { %2845 = vlog2.f32 %v1889_v17 }
 0x7c5   :  { %2018 = vst [vmem:[#allocation5 + $0x80] sm:$0xff] %v1986_v51  ;;  %v1987_v6 = vsub.f32 %v3672_v38, %v1941_v46  ;;  %v1883_v52 = vpop.xlane.xlu0 %1882 }
 0x7c6   :  { %2847 = vlog2.f32 %v1883_v52 }
 0x7c7   :  { %2019 = vst [vmem:[#allocation5 + $0x88] sm:$0xff] %v1987_v6  ;;  %v1885_v57 = vpop.xlane.xlu1 %1884 }
 0x7c8   :  { %2849 = vlog2.f32 %v1885_v57 }
 0x7cc   :  { %v2844_v14 = vpop.eup %2843 }
 0x7cd   :  { %v1951_v26 = vmul.f32 0.6931472, %v2844_v14 }
 0x7ce   :  { %v2846_v47 = vpop.eup %2845 }
 0x7cf   :  { %v1992_v23 = vsub.f32 %v3676_v58, %v1951_v26  ;;  %v1953_v4 = vmul.f32 0.6931472, %v2846_v47 }
 0x7d0   :  { %v2848_v22 = vpop.eup %2847 }
 0x7d1   :  { %2024 = vst [vmem:[#allocation5 + $0xb0] sm:$0xff] %v1992_v23  ;;  %v1993_v35 = vsub.f32 %v3680_v8, %v1953_v4  ;;  %v1947_v18 = vmul.f32 0.6931472, %v2848_v22  ;;  %v1895_v59 = vpop.xlane.xlu0 %1894 }
 0x7d2   :  { %v2850_v60 = vpop.eup %2849  ;;  %2851 = vlog2.f32 %v1895_v59 }
 0x7d3   :  { %2025 = vst [vmem:[#allocation5 + $0xb8] sm:$0xff] %v1993_v35  ;;  %v1990_v38 = vsub.f32 %v3684_v15, %v1947_v18  ;;  %v1949_v12 = vmul.f32 0.6931472, %v2850_v60  ;;  %v1897_v62 = vpop.xlane.xlu1 %1896 }
 0x7d4   :  { %2853 = vlog2.f32 %v1897_v62 }
 0x7d5   :  { %2022 = vst [vmem:[#allocation5 + $0xa0] sm:$0xff] %v1990_v38  ;;  %v1991_v29 = vsub.f32 %v3688_v9, %v1949_v12  ;;  %v1891_v24 = vpop.xlane.xlu0 %1890 }
 0x7d6   :  { %2855 = vlog2.f32 %v1891_v24 }
 0x7d7   :  { %2023 = vst [vmem:[#allocation5 + $0xa8] sm:$0xff] %v1991_v29  ;;  %v1893_v58 = vpop.xlane.xlu1 %1892 }
 0x7d8   :  { %2857 = vlog2.f32 %v1893_v58 }
 0x7dc   :  { %v2852_v30 = vpop.eup %2851 }
 0x7dd   :  { %v1959_v8 = vmul.f32 0.6931472, %v2852_v30 }
 0x7de   :  { %v2854_v3 = vpop.eup %2853 }
 0x7df   :  { %v1996_v31 = vsub.f32 %v3692_v63, %v1959_v8  ;;  %v1961_v32 = vmul.f32 0.6931472, %v2854_v3 }
 0x7e0   :  { %v2856_v1 = vpop.eup %2855 }
 0x7e1   :  { %2028 = vst [vmem:[#allocation5 + $0xd0] sm:$0xff] %v1996_v31  ;;  %v1997_v15 = vsub.f32 %v3696_v21, %v1961_v32  ;;  %v1955_v5 = vmul.f32 0.6931472, %v2856_v1 }
 0x7e2   :  { %v2858_v61 = vpop.eup %2857  ;;  %v1899_v25 = vpop.xlane.xlu0 %1898 }
 0x7e3   :  { %2029 = vst [vmem:[#allocation5 + $0xd8] sm:$0xff] %v1997_v15  ;;  %v1994_v9 = vsub.f32 %v3700_v27, %v1955_v5  ;;  %v1957_v20 = vmul.f32 0.6931472, %v2858_v61  ;;  %2859 = vlog2.f32 %v1899_v25 }
 0x7e4   :  { %v1901_v34 = vpop.xlane.xlu1 %1900 }
 0x7e5   :  { %2026 = vst [vmem:[#allocation5 + $0xc0] sm:$0xff] %v1994_v9  ;;  %v1995_v37 = vsub.f32 %v3704_v19, %v1957_v20  ;;  %2861 = vlog2.f32 %v1901_v34 }
 0x7e6   :  { %v1903_v45 = vpop.xlane.xlu0 %1902 }
 0x7e7   :  { %2027 = vst [vmem:[#allocation5 + $0xc8] sm:$0xff] %v1995_v37  ;;  %2863 = vlog2.f32 %v1903_v45 }
 0x7e8   :  { %v1905_v63 = vpop.xlane.xlu1 %1904 }
 0x7e9   :  { %2865 = vlog2.f32 %v1905_v63 }
 0x7ed   :  { %v2860_v56 = vpop.eup %2859 }
 0x7ee   :  { %v1963_v21 = vmul.f32 0.6931472, %v2860_v56 }
 0x7ef   :  { %v2862_v28 = vpop.eup %2861 }
 0x7f0   :  { %v1998_v10 = vsub.f32 %v3708_v36, %v1963_v21  ;;  %v1965_v11 = vmul.f32 0.6931472, %v2862_v28 }
 0x7f1   :  { %v2864_v33 = vpop.eup %2863 }
 0x7f2   :  { %2030 = vst [vmem:[#allocation5 + $0xe0] sm:$0xff] %v1998_v10  ;;  %v1999_v27 = vsub.f32 %v3712_v41, %v1965_v11  ;;  %v1967_v39 = vmul.f32 0.6931472, %v2864_v33 }
 0x7f3   :  { %v2866_v53 = vpop.eup %2865 }
 0x7f4   :  { %2031 = vst [vmem:[#allocation5 + $0xe8] sm:$0xff] %v1999_v27  ;;  %v2000_v19 = vsub.f32 %v3716_v16, %v1967_v39  ;;  %v1969_v48 = vmul.f32 0.6931472, %v2866_v53 }
 0x7f6   :  { %2032 = vst [vmem:[#allocation5 + $0xf0] sm:$0xff] %v2000_v19  ;;  %v2001_v13 = vsub.f32 %v3720_v7, %v1969_v48 }
 0x7f8   :  { %2033 = vst [vmem:[#allocation5 + $0xf8] sm:$0xff] %v2001_v13 }
 0x7f9   :  { %2900 = shalt.err (!%p2897_p12)
}
 0x7fa   :  { %s2901_s23 = scalar_lea.hbm %s3778_s8, 4096 }
 0x7fb   :  { %p2902_p13 = scmp.ne.s32.totalorder %s3778_s8, %s2901_s23  ;;  %p2905_p0 = scmp.lt.u32.totalorder %s2901_s23, %s3778_s8 }
 0x7fd   :  { %p2907_p1 = pnand %p2905_p0, %p2902_p13 }
 0x7ff   :  { %2910 = shalt.err (!%p2907_p1)
}
 0x800   :  { %2045 = dma.vmem_to_hbm [thread:$0]  %s2040_s19, 4096, %s3778_s8, [#allocation4], %s2916_s15, %s2916_s15, %s2917_s16  }
 0x801   :  { %2913 = dma.done.wait [#allocation4], 4096  }
 0x802   :  { %2914 = vsyncadd [#allocation4], 4294963200 }
 0x803   :  { %2049 = vsyncpa [#allocation3], 1 }
 0x804   :  { %2050 = vsyncpa [#allocation4], 1 }

</bundles_post_ra>
